<compile_context>
chip_gen: v7x
topology: tpu7x:2x2x1
jax: 0.10.0
libtpu: 0.0.40
codegen_flags: <defaults>
</compile_context>

<pallas_src>
import math
import functools

import jax
import jax.numpy as jnp
from jax.experimental import pallas as pl
from jax.experimental.pallas import tpu as pltpu


# ----------------------------------------------------------------------------
# Small whole-array linear kernel (embedding + final output projection only).
# ----------------------------------------------------------------------------
def _linear_kernel(x_ref, w_ref, b_ref, o_ref):
    y = jnp.dot(x_ref[...], w_ref[...], preferred_element_type=jnp.float32)
    o_ref[...] = (y + b_ref[...]).astype(o_ref.dtype)


def linear(x2d, w, b):
    """x2d: (M, K) f32, w: (K, N) f32, b: (N,) f32 -> (M, N) f32."""
    M, K = x2d.shape
    N = w.shape[1]
    return pl.pallas_call(
        _linear_kernel,
        out_shape=jax.ShapeDtypeStruct((M, N), jnp.float32),
        in_specs=[
            pl.BlockSpec((M, K), lambda: (0, 0)),
            pl.BlockSpec((K, N), lambda: (0, 0)),
            pl.BlockSpec((1, N), lambda: (0, 0)),
        ],
        out_specs=pl.BlockSpec((M, N), lambda: (0, 0)),
    )(x2d, w, b.reshape(1, N))


# ----------------------------------------------------------------------------
# Fully fused Transformer encoder layer kernel (one grid step per batch item).
# ----------------------------------------------------------------------------
def _make_encoder_kernel(H, dq, dv, eps, with_score):
    scale = 1.0 / math.sqrt(dq)
    HQ = H * dq

    def _layernorm(x, g, b):
        mean = jnp.mean(x, axis=-1, keepdims=True)
        d = x - mean
        var = jnp.mean(d * d, axis=-1, keepdims=True)   # biased, like torch LN
        return d * jax.lax.rsqrt(var + eps) * g + b

    def kernel(x_ref, wqkv_ref, bqkv_ref, wo_ref, bo_ref,
               ln1g_ref, ln1b_ref, ff1w_ref, ff1b_ref,
               ff2w_ref, ff2b_ref, ln2g_ref, ln2b_ref, *out_refs):
        y_ref = out_refs[0]
        s_ref = out_refs[1] if with_score else None

        x = x_ref[...]                                                   # (S, D)

        # ---- fused Q/K/V projection: one MXU pass, lane width H*(2q+v) ----
        qkv = (jnp.dot(x, wqkv_ref[...], preferred_element_type=jnp.float32)
               + bqkv_ref[...])                                          # (S, 2HQ+Hv)

        # ---- per-head attention (static unrolled loop, all in vregs) ----
        head_outs = []
        for i in range(H):
            qi = qkv[:, i * dq:(i + 1) * dq]                             # (S, dq)
            ki = qkv[:, HQ + i * dq:HQ + (i + 1) * dq]                   # (S, dq)
            vi = qkv[:, 2 * HQ + i * dv:2 * HQ + (i + 1) * dv]           # (S, dv)
            # q @ k^T without materializing a transpose
            s = jax.lax.dot_general(
                qi, ki, (((1,), (1,)), ((), ())),
                preferred_element_type=jnp.float32) * scale              # (S, S)
            if with_score:
                s_ref[i] = s          # pre-softmax scaled logits (== self.score)
            m = jnp.max(s, axis=-1, keepdims=True)
            p = jnp.exp(s - m)
            p = p * pl.reciprocal(jnp.sum(p, axis=-1, keepdims=True), approx=True)
            head_outs.append(jnp.dot(p, vi, preferred_element_type=jnp.float32))
        heads = jnp.concatenate(head_outs, axis=-1)                      # (S, H*dv)

        # ---- output projection + residual + LayerNorm 1 ----
        attn = (jnp.dot(heads, wo_ref[...], preferred_element_type=jnp.float32)
                + bo_ref[...])
        x1 = _layernorm(attn + x, ln1g_ref[...], ln1b_ref[...])

        # ---- feed-forward + residual + LayerNorm 2 ----
        h1 = jnp.maximum(
            jnp.dot(x1, ff1w_ref[...], preferred_element_type=jnp.float32)
            + ff1b_ref[...], 0.0)
        ff = (jnp.dot(h1, ff2w_ref[...], preferred_element_type=jnp.float32)
              + ff2b_ref[...])
        y_ref[...] = _layernorm(ff + x1, ln2g_ref[...], ln2b_ref[...]).astype(y_ref.dtype)

    return kernel


def encoder_layer(x, p, H, dq, dv, return_score):
    """x: (B, S, D) f32. One fused pallas_call; grid over batch (parallel)."""
    B, S, D = x.shape
    wqkv_w = p["wqkv_w"]
    n_qkv = wqkv_w.shape[1]
    d_hidden = p["ff1_w"].shape[1]

    kernel = _make_encoder_kernel(H=H, dq=dq, dv=dv, eps=1e-5,
                                  with_score=return_score)

    def _full(shape):
        return pl.BlockSpec(shape, lambda b: (0,) * len(shape))

    in_specs = [
        pl.BlockSpec((None, S, D), lambda b: (b, 0, 0)),     # x  (per-batch slab)
        _full((D, n_qkv)), _full((1, n_qkv)),                # fused QKV W, b
        _full((H * dv, D)), _full((1, D)),                   # W_o, b_o
        _full((1, D)), _full((1, D)),                        # LN1 gamma, beta
        _full((D, d_hidden)), _full((1, d_hidden)),          # FF linear_1
        _full((d_hidden, D)), _full((1, D)),                 # FF linear_2
        _full((1, D)), _full((1, D)),                        # LN2 gamma, beta
    ]
    y_spec = pl.BlockSpec((None, S, D), lambda b: (b, 0, 0))
    if return_score:
        out_shape = (jax.ShapeDtypeStruct((B, S, D), jnp.float32),
                     jax.ShapeDtypeStruct((H, B, S, S), jnp.float32))
        out_specs = (y_spec, pl.BlockSpec((H, None, S, S), lambda b: (0, b, 0, 0)))
    else:
        out_shape = jax.ShapeDtypeStruct((B, S, D), jnp.float32)
        out_specs = y_spec

    args = (
        x,
        wqkv_w, p["wqkv_b"].reshape(1, n_qkv),
        p["wo_w"], p["wo_b"].reshape(1, D),
        p["ln1_g"].reshape(1, D), p["ln1_b"].reshape(1, D),
        p["ff1_w"], p["ff1_b"].reshape(1, d_hidden),
        p["ff2_w"], p["ff2_b"].reshape(1, D),
        p["ln2_g"].reshape(1, D), p["ln2_b"].reshape(1, D),
    )

    out = pl.pallas_call(
        kernel,
        grid=(B,),
        out_shape=out_shape,
        in_specs=in_specs,
        out_specs=out_specs,
        compiler_params=pltpu.CompilerParams(
            dimension_semantics=("parallel",)),   # v7x: split batch across 2 TCs
    )(*args)

    if return_score:
        y, score = out
        # (H, B, S, S) -> (H*B, S, S): head-major, identical to PyTorch chunk/cat.
        return y, score.reshape(H * B, S, S)
    return out, None


# ----------------------------------------------------------------------------
# Module forward (matches GTN_channel_wise.forward, eval mode)
# ----------------------------------------------------------------------------
def gtn_channel_wise_forward(params, x, *, cfg, stage="test"):
    """x: (B, d_input, d_channel) f32 -> (output, encoding, score_channel)."""
    B, d_input, d_channel = x.shape
    d_model = cfg["d_model"]
    H, dq, dv = cfg["h"], cfg["q"], cfg["v"]

    # embedding_input(x.transpose(-1, -2)) -> (B, d_channel, d_model)
    xt = jnp.swapaxes(x, -1, -2).reshape(B * d_channel, d_input)
    enc = linear(xt, params["emb_w"], params["emb_b"]).reshape(B, d_channel, d_model)

    score_channel = None
    n_layers = len(params["encoders"])
    for idx, p in enumerate(params["encoders"]):
        want_score = idx == n_layers - 1        # only the last layer's score is returned
        enc, score = encoder_layer(enc, p, H, dq, dv, return_score=want_score)
        if score is not None:
            score_channel = score

    encoding = enc.reshape(B, d_channel * d_model)
    output = linear(encoding, params["out_w"], params["out_b"])
    return output, encoding, score_channel


# ----------------------------------------------------------------------------
# Deterministic parameter init (mimics torch.nn.Linear default init)
# ----------------------------------------------------------------------------
def _init_linear(key, d_in, d_out):
    k1, k2 = jax.random.split(key)
    bound = 1.0 / math.sqrt(d_in)
    w = jax.random.uniform(k1, (d_in, d_out), jnp.float32, -bound, bound)  # stored (in, out)
    b = jax.random.uniform(k2, (d_out,), jnp.float32, -bound, bound)
    return w, b


def _init_encoder(key, d_model, d_hidden, q, v, h):
    keys = jax.random.split(key, 6)
    wq_w, wq_b = _init_linear(keys[0], d_model, q * h)
    wk_w, wk_b = _init_linear(keys[1], d_model, q * h)
    wv_w, wv_b = _init_linear(keys[2], d_model, v * h)
    wo_w, wo_b = _init_linear(keys[3], v * h, d_model)
    ff1_w, ff1_b = _init_linear(keys[4], d_model, d_hidden)
    ff2_w, ff2_b = _init_linear(keys[5], d_hidden, d_model)
    return dict(
        wqkv_w=jnp.concatenate([wq_w, wk_w, wv_w], axis=1),   # (d_model, h*(2q+v))
        wqkv_b=jnp.concatenate([wq_b, wk_b, wv_b], axis=0),
        wo_w=wo_w, wo_b=wo_b,
        ff1_w=ff1_w, ff1_b=ff1_b, ff2_w=ff2_w, ff2_b=ff2_b,
        ln1_g=jnp.ones((d_model,), jnp.float32), ln1_b=jnp.zeros((d_model,), jnp.float32),
        ln2_g=jnp.ones((d_model,), jnp.float32), ln2_b=jnp.zeros((d_model,), jnp.float32),
    )


def init_params(key, cfg):
    N = cfg["N"]
    keys = jax.random.split(key, N + 2)
    encoders = [_init_encoder(keys[i], cfg["d_model"], cfg["d_hidden"],
                              cfg["q"], cfg["v"], cfg["h"]) for i in range(N)]
    emb_w, emb_b = _init_linear(keys[N], cfg["d_input"], cfg["d_model"])
    out_w, out_b = _init_linear(keys[N + 1], cfg["d_model"] * cfg["d_channel"], cfg["d_output"])
    return dict(encoders=encoders, emb_w=emb_w, emb_b=emb_b, out_w=out_w, out_b=out_b)


# ----------------------------------------------------------------------------
if __name__ == "__main__":
    cfg = dict(d_model=32, d_input=16, d_channel=8, d_output=4,
               d_hidden=64, q=8, v=8, h=4, N=2)
    B = 2

    key = jax.random.PRNGKey(0)
    k_x, k_p = jax.random.split(key)
    x = jax.random.normal(k_x, (B, cfg["d_input"], cfg["d_channel"]), dtype=jnp.float32)
    params = init_params(k_p, cfg)

    fwd = jax.jit(functools.partial(gtn_channel_wise_forward, cfg=cfg))
    output, encoding, score_channel = fwd(params, x)
    jax.block_until_ready((output, encoding, score_channel))

    assert output.shape == (B, cfg["d_output"])
    assert encoding.shape == (B, cfg["d_model"] * cfg["d_channel"])
    assert score_channel.shape == (cfg["h"] * B, cfg["d_channel"], cfg["d_channel"])
    assert bool(jnp.all(jnp.isfinite(output)))
    assert bool(jnp.all(jnp.isfinite(score_channel)))

    print("KERNEL_OK")
</pallas_src>

<mosaic_0001>
module attributes {stable_mosaic.version = 11 : i64} {
  func.func @_linear_kernel(%arg0: memref<16x16xf32, #tpu.memory_space<vmem>>, %arg1: memref<16x32xf32, #tpu.memory_space<vmem>>, %arg2: memref<1x32xf32, #tpu.memory_space<vmem>>, %arg3: memref<16x32xf32, #tpu.memory_space<vmem>>) attributes {dimension_semantics = [], scalar_prefetch = 0 : i64, scratch_operands = 0 : i64, tpu.core_type = #tpu.core_type<tc>} {
    %c0 = arith.constant 0 : index
    %c0_0 = arith.constant 0 : index
    %0 = vector.load %arg0[%c0, %c0_0] : memref<16x16xf32, #tpu.memory_space<vmem>>, vector<16x16xf32>
    %c0_1 = arith.constant 0 : index
    %c0_2 = arith.constant 0 : index
    %1 = vector.load %arg1[%c0_1, %c0_2] : memref<16x32xf32, #tpu.memory_space<vmem>>, vector<16x32xf32>
    %cst = arith.constant dense<0.000000e+00> : vector<16x32xf32>
    %2 = tpu.matmul %0, %1, %cst {dimension_numbers = #tpu.dot_dimension_numbers<[1], [0], [0], [1], [0, 0, 1, 1], [], []>} : vector<16x16xf32>, vector<16x32xf32>, vector<16x32xf32> -> vector<16x32xf32>
    %c0_3 = arith.constant 0 : index
    %c0_4 = arith.constant 0 : index
    %3 = vector.load %arg2[%c0_3, %c0_4] : memref<1x32xf32, #tpu.memory_space<vmem>>, vector<1x32xf32>
    %4 = vector.broadcast %3 : vector<1x32xf32> to vector<16x32xf32>
    %5 = arith.addf %2, %4 : vector<16x32xf32>
    %c0_5 = arith.constant 0 : index
    %c0_6 = arith.constant 0 : index
    %6 = vector.load %arg3[%c0_5, %c0_6] : memref<16x32xf32, #tpu.memory_space<vmem>>, vector<16x32xf32>
    tpu.vector_store %arg3[%c0_5, %c0_6], %5 {strides = array<i32>} : memref<16x32xf32, #tpu.memory_space<vmem>>, vector<16x32xf32>,
    return
  }
}

module attributes {stable_mosaic.version = 11 : i64} {
  func.func @kernel(%arg0: i32, %arg1: memref<1x8x32xf32, #tpu.memory_space<vmem>>, %arg2: memref<32x96xf32, #tpu.memory_space<vmem>>, %arg3: memref<1x96xf32, #tpu.memory_space<vmem>>, %arg4: memref<32x32xf32, #tpu.memory_space<vmem>>, %arg5: memref<1x32xf32, #tpu.memory_space<vmem>>, %arg6: memref<1x32xf32, #tpu.memory_space<vmem>>, %arg7: memref<1x32xf32, #tpu.memory_space<vmem>>, %arg8: memref<32x64xf32, #tpu.memory_space<vmem>>, %arg9: memref<1x64xf32, #tpu.memory_space<vmem>>, %arg10: memref<64x32xf32, #tpu.memory_space<vmem>>, %arg11: memref<1x32xf32, #tpu.memory_space<vmem>>, %arg12: memref<1x32xf32, #tpu.memory_space<vmem>>, %arg13: memref<1x32xf32, #tpu.memory_space<vmem>>, %arg14: memref<1x8x32xf32, #tpu.memory_space<vmem>>, %arg15: memref<4x1x8x8xf32, #tpu.memory_space<vmem>>) attributes {dimension_semantics = [#tpu.dimension_semantics<parallel>], iteration_bounds = array<i64: 2>, scalar_prefetch = 0 : i64, scratch_operands = 0 : i64, tpu.core_type = #tpu.core_type<tc>, window_params = [{transform_indices = @transform_0, window_bounds = array<i64: 1, 8, 32>}, {pipeline_mode = #tpu.pipeline_mode<synchronous>, transform_indices = @transform_1, window_bounds = array<i64: 32, 96>}, {pipeline_mode = #tpu.pipeline_mode<synchronous>, transform_indices = @transform_2, window_bounds = array<i64: 1, 96>}, {pipeline_mode = #tpu.pipeline_mode<synchronous>, transform_indices = @transform_3, window_bounds = array<i64: 32, 32>}, {pipeline_mode = #tpu.pipeline_mode<synchronous>, transform_indices = @transform_4, window_bounds = array<i64: 1, 32>}, {pipeline_mode = #tpu.pipeline_mode<synchronous>, transform_indices = @transform_5, window_bounds = array<i64: 1, 32>}, {pipeline_mode = #tpu.pipeline_mode<synchronous>, transform_indices = @transform_6, window_bounds = array<i64: 1, 32>}, {pipeline_mode = #tpu.pipeline_mode<synchronous>, transform_indices = @transform_7, window_bounds = array<i64: 32, 64>}, {pipeline_mode = #tpu.pipeline_mode<synchronous>, transform_indices = @transform_8, window_bounds = array<i64: 1, 64>}, {pipeline_mode = #tpu.pipeline_mode<synchronous>, transform_indices = @transform_9, window_bounds = array<i64: 64, 32>}, {pipeline_mode = #tpu.pipeline_mode<synchronous>, transform_indices = @transform_10, window_bounds = array<i64: 1, 32>}, {pipeline_mode = #tpu.pipeline_mode<synchronous>, transform_indices = @transform_11, window_bounds = array<i64: 1, 32>}, {pipeline_mode = #tpu.pipeline_mode<synchronous>, transform_indices = @transform_12, window_bounds = array<i64: 1, 32>}, {transform_indices = @transform_13, window_bounds = array<i64: 1, 8, 32>}, {transform_indices = @transform_14, window_bounds = array<i64: 4, 1, 8, 8>}]} {
    %c0 = arith.constant 0 : index
    %c0_0 = arith.constant 0 : index
    %c0_1 = arith.constant 0 : index
    %0 = vector.load %arg1[%c0, %c0_0, %c0_1] : memref<1x8x32xf32, #tpu.memory_space<vmem>>, vector<1x8x32xf32>
    %1 = vector.shape_cast %0 : vector<1x8x32xf32> to vector<8x32xf32>
    %c0_2 = arith.constant 0 : index
    %c0_3 = arith.constant 0 : index
    %2 = vector.load %arg2[%c0_2, %c0_3] : memref<32x96xf32, #tpu.memory_space<vmem>>, vector<32x96xf32>
    %cst = arith.constant dense<0.000000e+00> : vector<8x96xf32>
    %3 = tpu.matmul %1, %2, %cst {dimension_numbers = #tpu.dot_dimension_numbers<[1], [0], [0], [1], [0, 0, 1, 1], [], []>} : vector<8x32xf32>, vector<32x96xf32>, vector<8x96xf32> -> vector<8x96xf32>
    %c0_4 = arith.constant 0 : index
    %c0_5 = arith.constant 0 : index
    %4 = vector.load %arg3[%c0_4, %c0_5] : memref<1x96xf32, #tpu.memory_space<vmem>>, vector<1x96xf32>
    %5 = vector.broadcast %4 : vector<1x96xf32> to vector<8x96xf32>
    %6 = arith.addf %3, %5 : vector<8x96xf32>
    %7 = vector.extract_strided_slice %6 {offsets = [0, 0], sizes = [8, 8], strides = [1, 1]} : vector<8x96xf32> to vector<8x8xf32>
    %8 = vector.extract_strided_slice %6 {offsets = [0, 32], sizes = [8, 8], strides = [1, 1]} : vector<8x96xf32> to vector<8x8xf32>
    %9 = vector.extract_strided_slice %6 {offsets = [0, 64], sizes = [8, 8], strides = [1, 1]} : vector<8x96xf32> to vector<8x8xf32>
    %cst_6 = arith.constant dense<0.000000e+00> : vector<8x8xf32>
    %10 = tpu.matmul %7, %8, %cst_6 {dimension_numbers = #tpu.dot_dimension_numbers<[1], [1], [0], [0], [0, 0, 1, 0], [], []>} : vector<8x8xf32>, vector<8x8xf32>, vector<8x8xf32> -> vector<8x8xf32>
    %cst_7 = arith.constant 0.353553385 : f32
    %11 = vector.broadcast %cst_7 : f32 to vector<8x8xf32>
    %12 = arith.mulf %10, %11 : vector<8x8xf32>
    %c0_8 = arith.constant 0 : index
    %c0_9 = arith.constant 0 : index
    %c0_10 = arith.constant 0 : index
    %c0_11 = arith.constant 0 : index
    %13 = vector.load %arg15[%c0_8, %c0_9, %c0_10, %c0_11] : memref<4x1x8x8xf32, #tpu.memory_space<vmem>>, vector<1x1x8x8xf32>
    %14 = vector.shape_cast %13 : vector<1x1x8x8xf32> to vector<8x8xf32>
    %15 = vector.shape_cast %12 : vector<8x8xf32> to vector<1x1x8x8xf32>
    tpu.vector_store %arg15[%c0_8, %c0_9, %c0_10, %c0_11], %15 {strides = array<i32>} : memref<4x1x8x8xf32, #tpu.memory_space<vmem>>, vector<1x1x8x8xf32>,
    %cst_12 = arith.constant dense<0xFF800000> : vector<8xf32>
    %16 = vector.multi_reduction <maximumf>, %12, %cst_12 [1] : vector<8x8xf32> to vector<8xf32>
    %17 = vector.shape_cast %16 : vector<8xf32> to vector<8x1xf32>
    %18 = vector.broadcast %17 : vector<8x1xf32> to vector<8x8xf32>
    %19 = arith.subf %12, %18 : vector<8x8xf32>
    %20 = math.exp %19 : vector<8x8xf32>
    %cst_13 = arith.constant dense<0.000000e+00> : vector<8xf32>
    %21 = vector.multi_reduction <add>, %20, %cst_13 [1] : vector<8x8xf32> to vector<8xf32>
    %22 = vector.shape_cast %21 : vector<8xf32> to vector<8x1xf32>
    %23 = tpu.reciprocal %22 {approx = true} : vector<8x1xf32> -> vector<8x1xf32>
    %24 = vector.broadcast %23 : vector<8x1xf32> to vector<8x8xf32>
    %25 = arith.mulf %20, %24 : vector<8x8xf32>
    %cst_14 = arith.constant dense<0.000000e+00> : vector<8x8xf32>
    %26 = tpu.matmul %25, %9, %cst_14 {dimension_numbers = #tpu.dot_dimension_numbers<[1], [0], [0], [1], [0, 0, 1, 1], [], []>} : vector<8x8xf32>, vector<8x8xf32>, vector<8x8xf32> -> vector<8x8xf32>
    %27 = vector.extract_strided_slice %6 {offsets = [0, 8], sizes = [8, 8], strides = [1, 1]} : vector<8x96xf32> to vector<8x8xf32>
    %28 = vector.extract_strided_slice %6 {offsets = [0, 40], sizes = [8, 8], strides = [1, 1]} : vector<8x96xf32> to vector<8x8xf32>
    %29 = vector.extract_strided_slice %6 {offsets = [0, 72], sizes = [8, 8], strides = [1, 1]} : vector<8x96xf32> to vector<8x8xf32>
    %cst_15 = arith.constant dense<0.000000e+00> : vector<8x8xf32>
    %30 = tpu.matmul %27, %28, %cst_15 {dimension_numbers = #tpu.dot_dimension_numbers<[1], [1], [0], [0], [0, 0, 1, 0], [], []>} : vector<8x8xf32>, vector<8x8xf32>, vector<8x8xf32> -> vector<8x8xf32>
    %cst_16 = arith.constant 0.353553385 : f32
    %31 = vector.broadcast %cst_16 : f32 to vector<8x8xf32>
    %32 = arith.mulf %30, %31 : vector<8x8xf32>
    %c1 = arith.constant 1 : index
    %c0_17 = arith.constant 0 : index
    %c0_18 = arith.constant 0 : index
    %c0_19 = arith.constant 0 : index
    %33 = vector.load %arg15[%c1, %c0_17, %c0_18, %c0_19] : memref<4x1x8x8xf32, #tpu.memory_space<vmem>>, vector<1x1x8x8xf32>
    %34 = vector.shape_cast %33 : vector<1x1x8x8xf32> to vector<8x8xf32>
    %35 = vector.shape_cast %32 : vector<8x8xf32> to vector<1x1x8x8xf32>
    tpu.vector_store %arg15[%c1, %c0_17, %c0_18, %c0_19], %35 {strides = array<i32>} : memref<4x1x8x8xf32, #tpu.memory_space<vmem>>, vector<1x1x8x8xf32>,
    %cst_20 = arith.constant dense<0xFF800000> : vector<8xf32>
    %36 = vector.multi_reduction <maximumf>, %32, %cst_20 [1] : vector<8x8xf32> to vector<8xf32>
    %37 = vector.shape_cast %36 : vector<8xf32> to vector<8x1xf32>
    %38 = vector.broadcast %37 : vector<8x1xf32> to vector<8x8xf32>
    %39 = arith.subf %32, %38 : vector<8x8xf32>
    %40 = math.exp %39 : vector<8x8xf32>
    %cst_21 = arith.constant dense<0.000000e+00> : vector<8xf32>
    %41 = vector.multi_reduction <add>, %40, %cst_21 [1] : vector<8x8xf32> to vector<8xf32>
    %42 = vector.shape_cast %41 : vector<8xf32> to vector<8x1xf32>
    %43 = tpu.reciprocal %42 {approx = true} : vector<8x1xf32> -> vector<8x1xf32>
    %44 = vector.broadcast %43 : vector<8x1xf32> to vector<8x8xf32>
    %45 = arith.mulf %40, %44 : vector<8x8xf32>
    %cst_22 = arith.constant dense<0.000000e+00> : vector<8x8xf32>
    %46 = tpu.matmul %45, %29, %cst_22 {dimension_numbers = #tpu.dot_dimension_numbers<[1], [0], [0], [1], [0, 0, 1, 1], [], []>} : vector<8x8xf32>, vector<8x8xf32>, vector<8x8xf32> -> vector<8x8xf32>
    %47 = vector.extract_strided_slice %6 {offsets = [0, 16], sizes = [8, 8], strides = [1, 1]} : vector<8x96xf32> to vector<8x8xf32>
    %48 = vector.extract_strided_slice %6 {offsets = [0, 48], sizes = [8, 8], strides = [1, 1]} : vector<8x96xf32> to vector<8x8xf32>
    %49 = vector.extract_strided_slice %6 {offsets = [0, 80], sizes = [8, 8], strides = [1, 1]} : vector<8x96xf32> to vector<8x8xf32>
    %cst_23 = arith.constant dense<0.000000e+00> : vector<8x8xf32>
    %50 = tpu.matmul %47, %48, %cst_23 {dimension_numbers = #tpu.dot_dimension_numbers<[1], [1], [0], [0], [0, 0, 1, 0], [], []>} : vector<8x8xf32>, vector<8x8xf32>, vector<8x8xf32> -> vector<8x8xf32>
    %cst_24 = arith.constant 0.353553385 : f32
    %51 = vector.broadcast %cst_24 : f32 to vector<8x8xf32>
    %52 = arith.mulf %50, %51 : vector<8x8xf32>
    %c2 = arith.constant 2 : index
    %c0_25 = arith.constant 0 : index
    %c0_26 = arith.constant 0 : index
    %c0_27 = arith.constant 0 : index
    %53 = vector.load %arg15[%c2, %c0_25, %c0_26, %c0_27] : memref<4x1x8x8xf32, #tpu.memory_space<vmem>>, vector<1x1x8x8xf32>
    %54 = vector.shape_cast %53 : vector<1x1x8x8xf32> to vector<8x8xf32>
    %55 = vector.shape_cast %52 : vector<8x8xf32> to vector<1x1x8x8xf32>
    tpu.vector_store %arg15[%c2, %c0_25, %c0_26, %c0_27], %55 {strides = array<i32>} : memref<4x1x8x8xf32, #tpu.memory_space<vmem>>, vector<1x1x8x8xf32>,
    %cst_28 = arith.constant dense<0xFF800000> : vector<8xf32>
    %56 = vector.multi_reduction <maximumf>, %52, %cst_28 [1] : vector<8x8xf32> to vector<8xf32>
    %57 = vector.shape_cast %56 : vector<8xf32> to vector<8x1xf32>
    %58 = vector.broadcast %57 : vector<8x1xf32> to vector<8x8xf32>
    %59 = arith.subf %52, %58 : vector<8x8xf32>
    %60 = math.exp %59 : vector<8x8xf32>
    %cst_29 = arith.constant dense<0.000000e+00> : vector<8xf32>
    %61 = vector.multi_reduction <add>, %60, %cst_29 [1] : vector<8x8xf32> to vector<8xf32>
    %62 = vector.shape_cast %61 : vector<8xf32> to vector<8x1xf32>
    %63 = tpu.reciprocal %62 {approx = true} : vector<8x1xf32> -> vector<8x1xf32>
    %64 = vector.broadcast %63 : vector<8x1xf32> to vector<8x8xf32>
    %65 = arith.mulf %60, %64 : vector<8x8xf32>
    %cst_30 = arith.constant dense<0.000000e+00> : vector<8x8xf32>
    %66 = tpu.matmul %65, %49, %cst_30 {dimension_numbers = #tpu.dot_dimension_numbers<[1], [0], [0], [1], [0, 0, 1, 1], [], []>} : vector<8x8xf32>, vector<8x8xf32>, vector<8x8xf32> -> vector<8x8xf32>
    %67 = vector.extract_strided_slice %6 {offsets = [0, 24], sizes = [8, 8], strides = [1, 1]} : vector<8x96xf32> to vector<8x8xf32>
    %68 = vector.extract_strided_slice %6 {offsets = [0, 56], sizes = [8, 8], strides = [1, 1]} : vector<8x96xf32> to vector<8x8xf32>
    %69 = vector.extract_strided_slice %6 {offsets = [0, 88], sizes = [8, 8], strides = [1, 1]} : vector<8x96xf32> to vector<8x8xf32>
    %cst_31 = arith.constant dense<0.000000e+00> : vector<8x8xf32>
    %70 = tpu.matmul %67, %68, %cst_31 {dimension_numbers = #tpu.dot_dimension_numbers<[1], [1], [0], [0], [0, 0, 1, 0], [], []>} : vector<8x8xf32>, vector<8x8xf32>, vector<8x8xf32> -> vector<8x8xf32>
    %cst_32 = arith.constant 0.353553385 : f32
    %71 = vector.broadcast %cst_32 : f32 to vector<8x8xf32>
    %72 = arith.mulf %70, %71 : vector<8x8xf32>
    %c3 = arith.constant 3 : index
    %c0_33 = arith.constant 0 : index
    %c0_34 = arith.constant 0 : index
    %c0_35 = arith.constant 0 : index
    %73 = vector.load %arg15[%c3, %c0_33, %c0_34, %c0_35] : memref<4x1x8x8xf32, #tpu.memory_space<vmem>>, vector<1x1x8x8xf32>
    %74 = vector.shape_cast %73 : vector<1x1x8x8xf32> to vector<8x8xf32>
    %75 = vector.shape_cast %72 : vector<8x8xf32> to vector<1x1x8x8xf32>
    tpu.vector_store %arg15[%c3, %c0_33, %c0_34, %c0_35], %75 {strides = array<i32>} : memref<4x1x8x8xf32, #tpu.memory_space<vmem>>, vector<1x1x8x8xf32>,
    %cst_36 = arith.constant dense<0xFF800000> : vector<8xf32>
    %76 = vector.multi_reduction <maximumf>, %72, %cst_36 [1] : vector<8x8xf32> to vector<8xf32>
    %77 = vector.shape_cast %76 : vector<8xf32> to vector<8x1xf32>
    %78 = vector.broadcast %77 : vector<8x1xf32> to vector<8x8xf32>
    %79 = arith.subf %72, %78 : vector<8x8xf32>
    %80 = math.exp %79 : vector<8x8xf32>
    %cst_37 = arith.constant dense<0.000000e+00> : vector<8xf32>
    %81 = vector.multi_reduction <add>, %80, %cst_37 [1] : vector<8x8xf32> to vector<8xf32>
    %82 = vector.shape_cast %81 : vector<8xf32> to vector<8x1xf32>
    %83 = tpu.reciprocal %82 {approx = true} : vector<8x1xf32> -> vector<8x1xf32>
    %84 = vector.broadcast %83 : vector<8x1xf32> to vector<8x8xf32>
    %85 = arith.mulf %80, %84 : vector<8x8xf32>
    %cst_38 = arith.constant dense<0.000000e+00> : vector<8x8xf32>
    %86 = tpu.matmul %85, %69, %cst_38 {dimension_numbers = #tpu.dot_dimension_numbers<[1], [0], [0], [1], [0, 0, 1, 1], [], []>} : vector<8x8xf32>, vector<8x8xf32>, vector<8x8xf32> -> vector<8x8xf32>
    %87 = tpu.concatenate %26, %46, %66, %86 in 1 : vector<8x8xf32>, vector<8x8xf32>, vector<8x8xf32>, vector<8x8xf32> -> vector<8x32xf32>
    %c0_39 = arith.constant 0 : index
    %c0_40 = arith.constant 0 : index
    %88 = vector.load %arg4[%c0_39, %c0_40] : memref<32x32xf32, #tpu.memory_space<vmem>>, vector<32x32xf32>
    %cst_41 = arith.constant dense<0.000000e+00> : vector<8x32xf32>
    %89 = tpu.matmul %87, %88, %cst_41 {dimension_numbers = #tpu.dot_dimension_numbers<[1], [0], [0], [1], [0, 0, 1, 1], [], []>} : vector<8x32xf32>, vector<32x32xf32>, vector<8x32xf32> -> vector<8x32xf32>
    %c0_42 = arith.constant 0 : index
    %c0_43 = arith.constant 0 : index
    %90 = vector.load %arg5[%c0_42, %c0_43] : memref<1x32xf32, #tpu.memory_space<vmem>>, vector<1x32xf32>
    %91 = vector.broadcast %90 : vector<1x32xf32> to vector<8x32xf32>
    %92 = arith.addf %89, %91 : vector<8x32xf32>
    %93 = arith.addf %92, %1 : vector<8x32xf32>
    %c0_44 = arith.constant 0 : index
    %c0_45 = arith.constant 0 : index
    %94 = vector.load %arg6[%c0_44, %c0_45] : memref<1x32xf32, #tpu.memory_space<vmem>>, vector<1x32xf32>
    %c0_46 = arith.constant 0 : index
    %c0_47 = arith.constant 0 : index
    %95 = vector.load %arg7[%c0_46, %c0_47] : memref<1x32xf32, #tpu.memory_space<vmem>>, vector<1x32xf32>
    %cst_48 = arith.constant dense<0.000000e+00> : vector<8xf32>
    %96 = vector.multi_reduction <add>, %93, %cst_48 [1] : vector<8x32xf32> to vector<8xf32>
    %97 = vector.shape_cast %96 : vector<8xf32> to vector<8x1xf32>
    %cst_49 = arith.constant 3.200000e+01 : f32
    %98 = vector.broadcast %cst_49 : f32 to vector<8x1xf32>
    %99 = arith.divf %97, %98 : vector<8x1xf32>
    %100 = vector.broadcast %99 : vector<8x1xf32> to vector<8x32xf32>
    %101 = arith.subf %93, %100 : vector<8x32xf32>
    %102 = arith.mulf %101, %101 : vector<8x32xf32>
    %cst_50 = arith.constant dense<0.000000e+00> : vector<8xf32>
    %103 = vector.multi_reduction <add>, %102, %cst_50 [1] : vector<8x32xf32> to vector<8xf32>
    %104 = vector.shape_cast %103 : vector<8xf32> to vector<8x1xf32>
    %cst_51 = arith.constant 3.200000e+01 : f32
    %105 = vector.broadcast %cst_51 : f32 to vector<8x1xf32>
    %106 = arith.divf %104, %105 : vector<8x1xf32>
    %cst_52 = arith.constant 9.99999974E-6 : f32
    %107 = vector.broadcast %cst_52 : f32 to vector<8x1xf32>
    %108 = arith.addf %106, %107 : vector<8x1xf32>
    %109 = math.rsqrt %108 : vector<8x1xf32>
    %110 = vector.broadcast %109 : vector<8x1xf32> to vector<8x32xf32>
    %111 = arith.mulf %101, %110 : vector<8x32xf32>
    %112 = vector.broadcast %94 : vector<1x32xf32> to vector<8x32xf32>
    %113 = arith.mulf %111, %112 : vector<8x32xf32>
    %114 = vector.broadcast %95 : vector<1x32xf32> to vector<8x32xf32>
    %115 = arith.addf %113, %114 : vector<8x32xf32>
    %c0_53 = arith.constant 0 : index
    %c0_54 = arith.constant 0 : index
    %116 = vector.load %arg8[%c0_53, %c0_54] : memref<32x64xf32, #tpu.memory_space<vmem>>, vector<32x64xf32>
    %cst_55 = arith.constant dense<0.000000e+00> : vector<8x64xf32>
    %117 = tpu.matmul %115, %116, %cst_55 {dimension_numbers = #tpu.dot_dimension_numbers<[1], [0], [0], [1], [0, 0, 1, 1], [], []>} : vector<8x32xf32>, vector<32x64xf32>, vector<8x64xf32> -> vector<8x64xf32>
    %c0_56 = arith.constant 0 : index
    %c0_57 = arith.constant 0 : index
    %118 = vector.load %arg9[%c0_56, %c0_57] : memref<1x64xf32, #tpu.memory_space<vmem>>, vector<1x64xf32>
    %119 = vector.broadcast %118 : vector<1x64xf32> to vector<8x64xf32>
    %120 = arith.addf %117, %119 : vector<8x64xf32>
    %cst_58 = arith.constant 0.000000e+00 : f32
    %121 = vector.broadcast %cst_58 : f32 to vector<8x64xf32>
    %122 = arith.maximumf %120, %121 : vector<8x64xf32>
    %c0_59 = arith.constant 0 : index
    %c0_60 = arith.constant 0 : index
    %123 = vector.load %arg10[%c0_59, %c0_60] : memref<64x32xf32, #tpu.memory_space<vmem>>, vector<64x32xf32>
    %cst_61 = arith.constant dense<0.000000e+00> : vector<8x32xf32>
    %124 = tpu.matmul %122, %123, %cst_61 {dimension_numbers = #tpu.dot_dimension_numbers<[1], [0], [0], [1], [0, 0, 1, 1], [], []>} : vector<8x64xf32>, vector<64x32xf32>, vector<8x32xf32> -> vector<8x32xf32>
    %c0_62 = arith.constant 0 : index
    %c0_63 = arith.constant 0 : index
    %125 = vector.load %arg11[%c0_62, %c0_63] : memref<1x32xf32, #tpu.memory_space<vmem>>, vector<1x32xf32>
    %126 = vector.broadcast %125 : vector<1x32xf32> to vector<8x32xf32>
    %127 = arith.addf %124, %126 : vector<8x32xf32>
    %128 = arith.addf %127, %115 : vector<8x32xf32>
    %c0_64 = arith.constant 0 : index
    %c0_65 = arith.constant 0 : index
    %129 = vector.load %arg12[%c0_64, %c0_65] : memref<1x32xf32, #tpu.memory_space<vmem>>, vector<1x32xf32>
    %c0_66 = arith.constant 0 : index
    %c0_67 = arith.constant 0 : index
    %130 = vector.load %arg13[%c0_66, %c0_67] : memref<1x32xf32, #tpu.memory_space<vmem>>, vector<1x32xf32>
    %cst_68 = arith.constant dense<0.000000e+00> : vector<8xf32>
    %131 = vector.multi_reduction <add>, %128, %cst_68 [1] : vector<8x32xf32> to vector<8xf32>
    %132 = vector.shape_cast %131 : vector<8xf32> to vector<8x1xf32>
    %cst_69 = arith.constant 3.200000e+01 : f32
    %133 = vector.broadcast %cst_69 : f32 to vector<8x1xf32>
    %134 = arith.divf %132, %133 : vector<8x1xf32>
    %135 = vector.broadcast %134 : vector<8x1xf32> to vector<8x32xf32>
    %136 = arith.subf %128, %135 : vector<8x32xf32>
    %137 = arith.mulf %136, %136 : vector<8x32xf32>
    %cst_70 = arith.constant dense<0.000000e+00> : vector<8xf32>
    %138 = vector.multi_reduction <add>, %137, %cst_70 [1] : vector<8x32xf32> to vector<8xf32>
    %139 = vector.shape_cast %138 : vector<8xf32> to vector<8x1xf32>
    %cst_71 = arith.constant 3.200000e+01 : f32
    %140 = vector.broadcast %cst_71 : f32 to vector<8x1xf32>
    %141 = arith.divf %139, %140 : vector<8x1xf32>
    %cst_72 = arith.constant 9.99999974E-6 : f32
    %142 = vector.broadcast %cst_72 : f32 to vector<8x1xf32>
    %143 = arith.addf %141, %142 : vector<8x1xf32>
    %144 = math.rsqrt %143 : vector<8x1xf32>
    %145 = vector.broadcast %144 : vector<8x1xf32> to vector<8x32xf32>
    %146 = arith.mulf %136, %145 : vector<8x32xf32>
    %147 = vector.broadcast %129 : vector<1x32xf32> to vector<8x32xf32>
    %148 = arith.mulf %146, %147 : vector<8x32xf32>
    %149 = vector.broadcast %130 : vector<1x32xf32> to vector<8x32xf32>
    %150 = arith.addf %148, %149 : vector<8x32xf32>
    %c0_73 = arith.constant 0 : index
    %c0_74 = arith.constant 0 : index
    %c0_75 = arith.constant 0 : index
    %151 = vector.load %arg14[%c0_73, %c0_74, %c0_75] : memref<1x8x32xf32, #tpu.memory_space<vmem>>, vector<1x8x32xf32>
    %152 = vector.shape_cast %151 : vector<1x8x32xf32> to vector<8x32xf32>
    %153 = vector.shape_cast %150 : vector<8x32xf32> to vector<1x8x32xf32>
    tpu.vector_store %arg14[%c0_73, %c0_74, %c0_75], %153 {strides = array<i32>} : memref<1x8x32xf32, #tpu.memory_space<vmem>>, vector<1x8x32xf32>,
    return
  }
  func.func @transform_0(%arg0: i32) -> (i32, i32, i32) {
    %c0_i32 = arith.constant 0 : i32
    %c0_i32_0 = arith.constant 0 : i32
    %c0_i32_1 = arith.constant 0 : i32
    return %arg0, %c0_i32, %c0_i32_0 : i32, i32, i32
  }
  func.func @transform_1(%arg0: i32) -> (i32, i32) {
    %c0_i32 = arith.constant 0 : i32
    %c0_i32_0 = arith.constant 0 : i32
    %c0_i32_1 = arith.constant 0 : i32
    return %c0_i32, %c0_i32_0 : i32, i32
  }
  func.func @transform_2(%arg0: i32) -> (i32, i32) {
    %c0_i32 = arith.constant 0 : i32
    %c0_i32_0 = arith.constant 0 : i32
    %c0_i32_1 = arith.constant 0 : i32
    return %c0_i32, %c0_i32_0 : i32, i32
  }
  func.func @transform_3(%arg0: i32) -> (i32, i32) {
    %c0_i32 = arith.constant 0 : i32
    %c0_i32_0 = arith.constant 0 : i32
    %c0_i32_1 = arith.constant 0 : i32
    return %c0_i32, %c0_i32_0 : i32, i32
  }
  func.func @transform_4(%arg0: i32) -> (i32, i32) {
    %c0_i32 = arith.constant 0 : i32
    %c0_i32_0 = arith.constant 0 : i32
    %c0_i32_1 = arith.constant 0 : i32
    return %c0_i32, %c0_i32_0 : i32, i32
  }
  func.func @transform_5(%arg0: i32) -> (i32, i32) {
    %c0_i32 = arith.constant 0 : i32
    %c0_i32_0 = arith.constant 0 : i32
    %c0_i32_1 = arith.constant 0 : i32
    return %c0_i32, %c0_i32_0 : i32, i32
  }
  func.func @transform_6(%arg0: i32) -> (i32, i32) {
    %c0_i32 = arith.constant 0 : i32
    %c0_i32_0 = arith.constant 0 : i32
    %c0_i32_1 = arith.constant 0 : i32
    return %c0_i32, %c0_i32_0 : i32, i32
  }
  func.func @transform_7(%arg0: i32) -> (i32, i32) {
    %c0_i32 = arith.constant 0 : i32
    %c0_i32_0 = arith.constant 0 : i32
    %c0_i32_1 = arith.constant 0 : i32
    return %c0_i32, %c0_i32_0 : i32, i32
  }
  func.func @transform_8(%arg0: i32) -> (i32, i32) {
    %c0_i32 = arith.constant 0 : i32
    %c0_i32_0 = arith.constant 0 : i32
    %c0_i32_1 = arith.constant 0 : i32
    return %c0_i32, %c0_i32_0 : i32, i32
  }
  func.func @transform_9(%arg0: i32) -> (i32, i32) {
    %c0_i32 = arith.constant 0 : i32
    %c0_i32_0 = arith.constant 0 : i32
    %c0_i32_1 = arith.constant 0 : i32
    return %c0_i32, %c0_i32_0 : i32, i32
  }
  func.func @transform_10(%arg0: i32) -> (i32, i32) {
    %c0_i32 = arith.constant 0 : i32
    %c0_i32_0 = arith.constant 0 : i32
    %c0_i32_1 = arith.constant 0 : i32
    return %c0_i32, %c0_i32_0 : i32, i32
  }
  func.func @transform_11(%arg0: i32) -> (i32, i32) {
    %c0_i32 = arith.constant 0 : i32
    %c0_i32_0 = arith.constant 0 : i32
    %c0_i32_1 = arith.constant 0 : i32
    return %c0_i32, %c0_i32_0 : i32, i32
  }
  func.func @transform_12(%arg0: i32) -> (i32, i32) {
    %c0_i32 = arith.constant 0 : i32
    %c0_i32_0 = arith.constant 0 : i32
    %c0_i32_1 = arith.constant 0 : i32
    return %c0_i32, %c0_i32_0 : i32, i32
  }
  func.func @transform_13(%arg0: i32) -> (i32, i32, i32) {
    %c0_i32 = arith.constant 0 : i32
    %c0_i32_0 = arith.constant 0 : i32
    %c0_i32_1 = arith.constant 0 : i32
    return %arg0, %c0_i32, %c0_i32_0 : i32, i32, i32
  }
  func.func @transform_14(%arg0: i32) -> (i32, i32, i32, i32) {
    %c0_i32 = arith.constant 0 : i32
    %c0_i32_0 = arith.constant 0 : i32
    %c0_i32_1 = arith.constant 0 : i32
    %c0_i32_2 = arith.constant 0 : i32
    return %c0_i32, %arg0, %c0_i32_0, %c0_i32_1 : i32, i32, i32, i32
  }
}

module attributes {stable_mosaic.version = 11 : i64} {
  func.func @kernel(%arg0: i32, %arg1: memref<1x8x32xf32, #tpu.memory_space<vmem>>, %arg2: memref<32x96xf32, #tpu.memory_space<vmem>>, %arg3: memref<1x96xf32, #tpu.memory_space<vmem>>, %arg4: memref<32x32xf32, #tpu.memory_space<vmem>>, %arg5: memref<1x32xf32, #tpu.memory_space<vmem>>, %arg6: memref<1x32xf32, #tpu.memory_space<vmem>>, %arg7: memref<1x32xf32, #tpu.memory_space<vmem>>, %arg8: memref<32x64xf32, #tpu.memory_space<vmem>>, %arg9: memref<1x64xf32, #tpu.memory_space<vmem>>, %arg10: memref<64x32xf32, #tpu.memory_space<vmem>>, %arg11: memref<1x32xf32, #tpu.memory_space<vmem>>, %arg12: memref<1x32xf32, #tpu.memory_space<vmem>>, %arg13: memref<1x32xf32, #tpu.memory_space<vmem>>, %arg14: memref<1x8x32xf32, #tpu.memory_space<vmem>>) attributes {dimension_semantics = [#tpu.dimension_semantics<parallel>], iteration_bounds = array<i64: 2>, scalar_prefetch = 0 : i64, scratch_operands = 0 : i64, tpu.core_type = #tpu.core_type<tc>, window_params = [{transform_indices = @transform_0, window_bounds = array<i64: 1, 8, 32>}, {pipeline_mode = #tpu.pipeline_mode<synchronous>, transform_indices = @transform_1, window_bounds = array<i64: 32, 96>}, {pipeline_mode = #tpu.pipeline_mode<synchronous>, transform_indices = @transform_2, window_bounds = array<i64: 1, 96>}, {pipeline_mode = #tpu.pipeline_mode<synchronous>, transform_indices = @transform_3, window_bounds = array<i64: 32, 32>}, {pipeline_mode = #tpu.pipeline_mode<synchronous>, transform_indices = @transform_4, window_bounds = array<i64: 1, 32>}, {pipeline_mode = #tpu.pipeline_mode<synchronous>, transform_indices = @transform_5, window_bounds = array<i64: 1, 32>}, {pipeline_mode = #tpu.pipeline_mode<synchronous>, transform_indices = @transform_6, window_bounds = array<i64: 1, 32>}, {pipeline_mode = #tpu.pipeline_mode<synchronous>, transform_indices = @transform_7, window_bounds = array<i64: 32, 64>}, {pipeline_mode = #tpu.pipeline_mode<synchronous>, transform_indices = @transform_8, window_bounds = array<i64: 1, 64>}, {pipeline_mode = #tpu.pipeline_mode<synchronous>, transform_indices = @transform_9, window_bounds = array<i64: 64, 32>}, {pipeline_mode = #tpu.pipeline_mode<synchronous>, transform_indices = @transform_10, window_bounds = array<i64: 1, 32>}, {pipeline_mode = #tpu.pipeline_mode<synchronous>, transform_indices = @transform_11, window_bounds = array<i64: 1, 32>}, {pipeline_mode = #tpu.pipeline_mode<synchronous>, transform_indices = @transform_12, window_bounds = array<i64: 1, 32>}, {transform_indices = @transform_13, window_bounds = array<i64: 1, 8, 32>}]} {
    %c0 = arith.constant 0 : index
    %c0_0 = arith.constant 0 : index
    %c0_1 = arith.constant 0 : index
    %0 = vector.load %arg1[%c0, %c0_0, %c0_1] : memref<1x8x32xf32, #tpu.memory_space<vmem>>, vector<1x8x32xf32>
    %1 = vector.shape_cast %0 : vector<1x8x32xf32> to vector<8x32xf32>
    %c0_2 = arith.constant 0 : index
    %c0_3 = arith.constant 0 : index
    %2 = vector.load %arg2[%c0_2, %c0_3] : memref<32x96xf32, #tpu.memory_space<vmem>>, vector<32x96xf32>
    %cst = arith.constant dense<0.000000e+00> : vector<8x96xf32>
    %3 = tpu.matmul %1, %2, %cst {dimension_numbers = #tpu.dot_dimension_numbers<[1], [0], [0], [1], [0, 0, 1, 1], [], []>} : vector<8x32xf32>, vector<32x96xf32>, vector<8x96xf32> -> vector<8x96xf32>
    %c0_4 = arith.constant 0 : index
    %c0_5 = arith.constant 0 : index
    %4 = vector.load %arg3[%c0_4, %c0_5] : memref<1x96xf32, #tpu.memory_space<vmem>>, vector<1x96xf32>
    %5 = vector.broadcast %4 : vector<1x96xf32> to vector<8x96xf32>
    %6 = arith.addf %3, %5 : vector<8x96xf32>
    %7 = vector.extract_strided_slice %6 {offsets = [0, 0], sizes = [8, 8], strides = [1, 1]} : vector<8x96xf32> to vector<8x8xf32>
    %8 = vector.extract_strided_slice %6 {offsets = [0, 32], sizes = [8, 8], strides = [1, 1]} : vector<8x96xf32> to vector<8x8xf32>
    %9 = vector.extract_strided_slice %6 {offsets = [0, 64], sizes = [8, 8], strides = [1, 1]} : vector<8x96xf32> to vector<8x8xf32>
    %cst_6 = arith.constant dense<0.000000e+00> : vector<8x8xf32>
    %10 = tpu.matmul %7, %8, %cst_6 {dimension_numbers = #tpu.dot_dimension_numbers<[1], [1], [0], [0], [0, 0, 1, 0], [], []>} : vector<8x8xf32>, vector<8x8xf32>, vector<8x8xf32> -> vector<8x8xf32>
    %cst_7 = arith.constant 0.353553385 : f32
    %11 = vector.broadcast %cst_7 : f32 to vector<8x8xf32>
    %12 = arith.mulf %10, %11 : vector<8x8xf32>
    %cst_8 = arith.constant dense<0xFF800000> : vector<8xf32>
    %13 = vector.multi_reduction <maximumf>, %12, %cst_8 [1] : vector<8x8xf32> to vector<8xf32>
    %14 = vector.shape_cast %13 : vector<8xf32> to vector<8x1xf32>
    %15 = vector.broadcast %14 : vector<8x1xf32> to vector<8x8xf32>
    %16 = arith.subf %12, %15 : vector<8x8xf32>
    %17 = math.exp %16 : vector<8x8xf32>
    %cst_9 = arith.constant dense<0.000000e+00> : vector<8xf32>
    %18 = vector.multi_reduction <add>, %17, %cst_9 [1] : vector<8x8xf32> to vector<8xf32>
    %19 = vector.shape_cast %18 : vector<8xf32> to vector<8x1xf32>
    %20 = tpu.reciprocal %19 {approx = true} : vector<8x1xf32> -> vector<8x1xf32>
    %21 = vector.broadcast %20 : vector<8x1xf32> to vector<8x8xf32>
    %22 = arith.mulf %17, %21 : vector<8x8xf32>
    %cst_10 = arith.constant dense<0.000000e+00> : vector<8x8xf32>
    %23 = tpu.matmul %22, %9, %cst_10 {dimension_numbers = #tpu.dot_dimension_numbers<[1], [0], [0], [1], [0, 0, 1, 1], [], []>} : vector<8x8xf32>, vector<8x8xf32>, vector<8x8xf32> -> vector<8x8xf32>
    %24 = vector.extract_strided_slice %6 {offsets = [0, 8], sizes = [8, 8], strides = [1, 1]} : vector<8x96xf32> to vector<8x8xf32>
    %25 = vector.extract_strided_slice %6 {offsets = [0, 40], sizes = [8, 8], strides = [1, 1]} : vector<8x96xf32> to vector<8x8xf32>
    %26 = vector.extract_strided_slice %6 {offsets = [0, 72], sizes = [8, 8], strides = [1, 1]} : vector<8x96xf32> to vector<8x8xf32>
    %cst_11 = arith.constant dense<0.000000e+00> : vector<8x8xf32>
    %27 = tpu.matmul %24, %25, %cst_11 {dimension_numbers = #tpu.dot_dimension_numbers<[1], [1], [0], [0], [0, 0, 1, 0], [], []>} : vector<8x8xf32>, vector<8x8xf32>, vector<8x8xf32> -> vector<8x8xf32>
    %cst_12 = arith.constant 0.353553385 : f32
    %28 = vector.broadcast %cst_12 : f32 to vector<8x8xf32>
    %29 = arith.mulf %27, %28 : vector<8x8xf32>
    %cst_13 = arith.constant dense<0xFF800000> : vector<8xf32>
    %30 = vector.multi_reduction <maximumf>, %29, %cst_13 [1] : vector<8x8xf32> to vector<8xf32>
    %31 = vector.shape_cast %30 : vector<8xf32> to vector<8x1xf32>
    %32 = vector.broadcast %31 : vector<8x1xf32> to vector<8x8xf32>
    %33 = arith.subf %29, %32 : vector<8x8xf32>
    %34 = math.exp %33 : vector<8x8xf32>
    %cst_14 = arith.constant dense<0.000000e+00> : vector<8xf32>
    %35 = vector.multi_reduction <add>, %34, %cst_14 [1] : vector<8x8xf32> to vector<8xf32>
    %36 = vector.shape_cast %35 : vector<8xf32> to vector<8x1xf32>
    %37 = tpu.reciprocal %36 {approx = true} : vector<8x1xf32> -> vector<8x1xf32>
    %38 = vector.broadcast %37 : vector<8x1xf32> to vector<8x8xf32>
    %39 = arith.mulf %34, %38 : vector<8x8xf32>
    %cst_15 = arith.constant dense<0.000000e+00> : vector<8x8xf32>
    %40 = tpu.matmul %39, %26, %cst_15 {dimension_numbers = #tpu.dot_dimension_numbers<[1], [0], [0], [1], [0, 0, 1, 1], [], []>} : vector<8x8xf32>, vector<8x8xf32>, vector<8x8xf32> -> vector<8x8xf32>
    %41 = vector.extract_strided_slice %6 {offsets = [0, 16], sizes = [8, 8], strides = [1, 1]} : vector<8x96xf32> to vector<8x8xf32>
    %42 = vector.extract_strided_slice %6 {offsets = [0, 48], sizes = [8, 8], strides = [1, 1]} : vector<8x96xf32> to vector<8x8xf32>
    %43 = vector.extract_strided_slice %6 {offsets = [0, 80], sizes = [8, 8], strides = [1, 1]} : vector<8x96xf32> to vector<8x8xf32>
    %cst_16 = arith.constant dense<0.000000e+00> : vector<8x8xf32>
    %44 = tpu.matmul %41, %42, %cst_16 {dimension_numbers = #tpu.dot_dimension_numbers<[1], [1], [0], [0], [0, 0, 1, 0], [], []>} : vector<8x8xf32>, vector<8x8xf32>, vector<8x8xf32> -> vector<8x8xf32>
    %cst_17 = arith.constant 0.353553385 : f32
    %45 = vector.broadcast %cst_17 : f32 to vector<8x8xf32>
    %46 = arith.mulf %44, %45 : vector<8x8xf32>
    %cst_18 = arith.constant dense<0xFF800000> : vector<8xf32>
    %47 = vector.multi_reduction <maximumf>, %46, %cst_18 [1] : vector<8x8xf32> to vector<8xf32>
    %48 = vector.shape_cast %47 : vector<8xf32> to vector<8x1xf32>
    %49 = vector.broadcast %48 : vector<8x1xf32> to vector<8x8xf32>
    %50 = arith.subf %46, %49 : vector<8x8xf32>
    %51 = math.exp %50 : vector<8x8xf32>
    %cst_19 = arith.constant dense<0.000000e+00> : vector<8xf32>
    %52 = vector.multi_reduction <add>, %51, %cst_19 [1] : vector<8x8xf32> to vector<8xf32>
    %53 = vector.shape_cast %52 : vector<8xf32> to vector<8x1xf32>
    %54 = tpu.reciprocal %53 {approx = true} : vector<8x1xf32> -> vector<8x1xf32>
    %55 = vector.broadcast %54 : vector<8x1xf32> to vector<8x8xf32>
    %56 = arith.mulf %51, %55 : vector<8x8xf32>
    %cst_20 = arith.constant dense<0.000000e+00> : vector<8x8xf32>
    %57 = tpu.matmul %56, %43, %cst_20 {dimension_numbers = #tpu.dot_dimension_numbers<[1], [0], [0], [1], [0, 0, 1, 1], [], []>} : vector<8x8xf32>, vector<8x8xf32>, vector<8x8xf32> -> vector<8x8xf32>
    %58 = vector.extract_strided_slice %6 {offsets = [0, 24], sizes = [8, 8], strides = [1, 1]} : vector<8x96xf32> to vector<8x8xf32>
    %59 = vector.extract_strided_slice %6 {offsets = [0, 56], sizes = [8, 8], strides = [1, 1]} : vector<8x96xf32> to vector<8x8xf32>
    %60 = vector.extract_strided_slice %6 {offsets = [0, 88], sizes = [8, 8], strides = [1, 1]} : vector<8x96xf32> to vector<8x8xf32>
    %cst_21 = arith.constant dense<0.000000e+00> : vector<8x8xf32>
    %61 = tpu.matmul %58, %59, %cst_21 {dimension_numbers = #tpu.dot_dimension_numbers<[1], [1], [0], [0], [0, 0, 1, 0], [], []>} : vector<8x8xf32>, vector<8x8xf32>, vector<8x8xf32> -> vector<8x8xf32>
    %cst_22 = arith.constant 0.353553385 : f32
    %62 = vector.broadcast %cst_22 : f32 to vector<8x8xf32>
    %63 = arith.mulf %61, %62 : vector<8x8xf32>
    %cst_23 = arith.constant dense<0xFF800000> : vector<8xf32>
    %64 = vector.multi_reduction <maximumf>, %63, %cst_23 [1] : vector<8x8xf32> to vector<8xf32>
    %65 = vector.shape_cast %64 : vector<8xf32> to vector<8x1xf32>
    %66 = vector.broadcast %65 : vector<8x1xf32> to vector<8x8xf32>
    %67 = arith.subf %63, %66 : vector<8x8xf32>
    %68 = math.exp %67 : vector<8x8xf32>
    %cst_24 = arith.constant dense<0.000000e+00> : vector<8xf32>
    %69 = vector.multi_reduction <add>, %68, %cst_24 [1] : vector<8x8xf32> to vector<8xf32>
    %70 = vector.shape_cast %69 : vector<8xf32> to vector<8x1xf32>
    %71 = tpu.reciprocal %70 {approx = true} : vector<8x1xf32> -> vector<8x1xf32>
    %72 = vector.broadcast %71 : vector<8x1xf32> to vector<8x8xf32>
    %73 = arith.mulf %68, %72 : vector<8x8xf32>
    %cst_25 = arith.constant dense<0.000000e+00> : vector<8x8xf32>
    %74 = tpu.matmul %73, %60, %cst_25 {dimension_numbers = #tpu.dot_dimension_numbers<[1], [0], [0], [1], [0, 0, 1, 1], [], []>} : vector<8x8xf32>, vector<8x8xf32>, vector<8x8xf32> -> vector<8x8xf32>
    %75 = tpu.concatenate %23, %40, %57, %74 in 1 : vector<8x8xf32>, vector<8x8xf32>, vector<8x8xf32>, vector<8x8xf32> -> vector<8x32xf32>
    %c0_26 = arith.constant 0 : index
    %c0_27 = arith.constant 0 : index
    %76 = vector.load %arg4[%c0_26, %c0_27] : memref<32x32xf32, #tpu.memory_space<vmem>>, vector<32x32xf32>
    %cst_28 = arith.constant dense<0.000000e+00> : vector<8x32xf32>
    %77 = tpu.matmul %75, %76, %cst_28 {dimension_numbers = #tpu.dot_dimension_numbers<[1], [0], [0], [1], [0, 0, 1, 1], [], []>} : vector<8x32xf32>, vector<32x32xf32>, vector<8x32xf32> -> vector<8x32xf32>
    %c0_29 = arith.constant 0 : index
    %c0_30 = arith.constant 0 : index
    %78 = vector.load %arg5[%c0_29, %c0_30] : memref<1x32xf32, #tpu.memory_space<vmem>>, vector<1x32xf32>
    %79 = vector.broadcast %78 : vector<1x32xf32> to vector<8x32xf32>
    %80 = arith.addf %77, %79 : vector<8x32xf32>
    %81 = arith.addf %80, %1 : vector<8x32xf32>
    %c0_31 = arith.constant 0 : index
    %c0_32 = arith.constant 0 : index
    %82 = vector.load %arg6[%c0_31, %c0_32] : memref<1x32xf32, #tpu.memory_space<vmem>>, vector<1x32xf32>
    %c0_33 = arith.constant 0 : index
    %c0_34 = arith.constant 0 : index
    %83 = vector.load %arg7[%c0_33, %c0_34] : memref<1x32xf32, #tpu.memory_space<vmem>>, vector<1x32xf32>
    %cst_35 = arith.constant dense<0.000000e+00> : vector<8xf32>
    %84 = vector.multi_reduction <add>, %81, %cst_35 [1] : vector<8x32xf32> to vector<8xf32>
    %85 = vector.shape_cast %84 : vector<8xf32> to vector<8x1xf32>
    %cst_36 = arith.constant 3.200000e+01 : f32
    %86 = vector.broadcast %cst_36 : f32 to vector<8x1xf32>
    %87 = arith.divf %85, %86 : vector<8x1xf32>
    %88 = vector.broadcast %87 : vector<8x1xf32> to vector<8x32xf32>
    %89 = arith.subf %81, %88 : vector<8x32xf32>
    %90 = arith.mulf %89, %89 : vector<8x32xf32>
    %cst_37 = arith.constant dense<0.000000e+00> : vector<8xf32>
    %91 = vector.multi_reduction <add>, %90, %cst_37 [1] : vector<8x32xf32> to vector<8xf32>
    %92 = vector.shape_cast %91 : vector<8xf32> to vector<8x1xf32>
    %cst_38 = arith.constant 3.200000e+01 : f32
    %93 = vector.broadcast %cst_38 : f32 to vector<8x1xf32>
    %94 = arith.divf %92, %93 : vector<8x1xf32>
    %cst_39 = arith.constant 9.99999974E-6 : f32
    %95 = vector.broadcast %cst_39 : f32 to vector<8x1xf32>
    %96 = arith.addf %94, %95 : vector<8x1xf32>
    %97 = math.rsqrt %96 : vector<8x1xf32>
    %98 = vector.broadcast %97 : vector<8x1xf32> to vector<8x32xf32>
    %99 = arith.mulf %89, %98 : vector<8x32xf32>
    %100 = vector.broadcast %82 : vector<1x32xf32> to vector<8x32xf32>
    %101 = arith.mulf %99, %100 : vector<8x32xf32>
    %102 = vector.broadcast %83 : vector<1x32xf32> to vector<8x32xf32>
    %103 = arith.addf %101, %102 : vector<8x32xf32>
    %c0_40 = arith.constant 0 : index
    %c0_41 = arith.constant 0 : index
    %104 = vector.load %arg8[%c0_40, %c0_41] : memref<32x64xf32, #tpu.memory_space<vmem>>, vector<32x64xf32>
    %cst_42 = arith.constant dense<0.000000e+00> : vector<8x64xf32>
    %105 = tpu.matmul %103, %104, %cst_42 {dimension_numbers = #tpu.dot_dimension_numbers<[1], [0], [0], [1], [0, 0, 1, 1], [], []>} : vector<8x32xf32>, vector<32x64xf32>, vector<8x64xf32> -> vector<8x64xf32>
    %c0_43 = arith.constant 0 : index
    %c0_44 = arith.constant 0 : index
    %106 = vector.load %arg9[%c0_43, %c0_44] : memref<1x64xf32, #tpu.memory_space<vmem>>, vector<1x64xf32>
    %107 = vector.broadcast %106 : vector<1x64xf32> to vector<8x64xf32>
    %108 = arith.addf %105, %107 : vector<8x64xf32>
    %cst_45 = arith.constant 0.000000e+00 : f32
    %109 = vector.broadcast %cst_45 : f32 to vector<8x64xf32>
    %110 = arith.maximumf %108, %109 : vector<8x64xf32>
    %c0_46 = arith.constant 0 : index
    %c0_47 = arith.constant 0 : index
    %111 = vector.load %arg10[%c0_46, %c0_47] : memref<64x32xf32, #tpu.memory_space<vmem>>, vector<64x32xf32>
    %cst_48 = arith.constant dense<0.000000e+00> : vector<8x32xf32>
    %112 = tpu.matmul %110, %111, %cst_48 {dimension_numbers = #tpu.dot_dimension_numbers<[1], [0], [0], [1], [0, 0, 1, 1], [], []>} : vector<8x64xf32>, vector<64x32xf32>, vector<8x32xf32> -> vector<8x32xf32>
    %c0_49 = arith.constant 0 : index
    %c0_50 = arith.constant 0 : index
    %113 = vector.load %arg11[%c0_49, %c0_50] : memref<1x32xf32, #tpu.memory_space<vmem>>, vector<1x32xf32>
    %114 = vector.broadcast %113 : vector<1x32xf32> to vector<8x32xf32>
    %115 = arith.addf %112, %114 : vector<8x32xf32>
    %116 = arith.addf %115, %103 : vector<8x32xf32>
    %c0_51 = arith.constant 0 : index
    %c0_52 = arith.constant 0 : index
    %117 = vector.load %arg12[%c0_51, %c0_52] : memref<1x32xf32, #tpu.memory_space<vmem>>, vector<1x32xf32>
    %c0_53 = arith.constant 0 : index
    %c0_54 = arith.constant 0 : index
    %118 = vector.load %arg13[%c0_53, %c0_54] : memref<1x32xf32, #tpu.memory_space<vmem>>, vector<1x32xf32>
    %cst_55 = arith.constant dense<0.000000e+00> : vector<8xf32>
    %119 = vector.multi_reduction <add>, %116, %cst_55 [1] : vector<8x32xf32> to vector<8xf32>
    %120 = vector.shape_cast %119 : vector<8xf32> to vector<8x1xf32>
    %cst_56 = arith.constant 3.200000e+01 : f32
    %121 = vector.broadcast %cst_56 : f32 to vector<8x1xf32>
    %122 = arith.divf %120, %121 : vector<8x1xf32>
    %123 = vector.broadcast %122 : vector<8x1xf32> to vector<8x32xf32>
    %124 = arith.subf %116, %123 : vector<8x32xf32>
    %125 = arith.mulf %124, %124 : vector<8x32xf32>
    %cst_57 = arith.constant dense<0.000000e+00> : vector<8xf32>
    %126 = vector.multi_reduction <add>, %125, %cst_57 [1] : vector<8x32xf32> to vector<8xf32>
    %127 = vector.shape_cast %126 : vector<8xf32> to vector<8x1xf32>
    %cst_58 = arith.constant 3.200000e+01 : f32
    %128 = vector.broadcast %cst_58 : f32 to vector<8x1xf32>
    %129 = arith.divf %127, %128 : vector<8x1xf32>
    %cst_59 = arith.constant 9.99999974E-6 : f32
    %130 = vector.broadcast %cst_59 : f32 to vector<8x1xf32>
    %131 = arith.addf %129, %130 : vector<8x1xf32>
    %132 = math.rsqrt %131 : vector<8x1xf32>
    %133 = vector.broadcast %132 : vector<8x1xf32> to vector<8x32xf32>
    %134 = arith.mulf %124, %133 : vector<8x32xf32>
    %135 = vector.broadcast %117 : vector<1x32xf32> to vector<8x32xf32>
    %136 = arith.mulf %134, %135 : vector<8x32xf32>
    %137 = vector.broadcast %118 : vector<1x32xf32> to vector<8x32xf32>
    %138 = arith.addf %136, %137 : vector<8x32xf32>
    %c0_60 = arith.constant 0 : index
    %c0_61 = arith.constant 0 : index
    %c0_62 = arith.constant 0 : index
    %139 = vector.load %arg14[%c0_60, %c0_61, %c0_62] : memref<1x8x32xf32, #tpu.memory_space<vmem>>, vector<1x8x32xf32>
    %140 = vector.shape_cast %139 : vector<1x8x32xf32> to vector<8x32xf32>
    %141 = vector.shape_cast %138 : vector<8x32xf32> to vector<1x8x32xf32>
    tpu.vector_store %arg14[%c0_60, %c0_61, %c0_62], %141 {strides = array<i32>} : memref<1x8x32xf32, #tpu.memory_space<vmem>>, vector<1x8x32xf32>,
    return
  }
  func.func @transform_0(%arg0: i32) -> (i32, i32, i32) {
    %c0_i32 = arith.constant 0 : i32
    %c0_i32_0 = arith.constant 0 : i32
    %c0_i32_1 = arith.constant 0 : i32
    return %arg0, %c0_i32, %c0_i32_0 : i32, i32, i32
  }
  func.func @transform_1(%arg0: i32) -> (i32, i32) {
    %c0_i32 = arith.constant 0 : i32
    %c0_i32_0 = arith.constant 0 : i32
    %c0_i32_1 = arith.constant 0 : i32
    return %c0_i32, %c0_i32_0 : i32, i32
  }
  func.func @transform_2(%arg0: i32) -> (i32, i32) {
    %c0_i32 = arith.constant 0 : i32
    %c0_i32_0 = arith.constant 0 : i32
    %c0_i32_1 = arith.constant 0 : i32
    return %c0_i32, %c0_i32_0 : i32, i32
  }
  func.func @transform_3(%arg0: i32) -> (i32, i32) {
    %c0_i32 = arith.constant 0 : i32
    %c0_i32_0 = arith.constant 0 : i32
    %c0_i32_1 = arith.constant 0 : i32
    return %c0_i32, %c0_i32_0 : i32, i32
  }
  func.func @transform_4(%arg0: i32) -> (i32, i32) {
    %c0_i32 = arith.constant 0 : i32
    %c0_i32_0 = arith.constant 0 : i32
    %c0_i32_1 = arith.constant 0 : i32
    return %c0_i32, %c0_i32_0 : i32, i32
  }
  func.func @transform_5(%arg0: i32) -> (i32, i32) {
    %c0_i32 = arith.constant 0 : i32
    %c0_i32_0 = arith.constant 0 : i32
    %c0_i32_1 = arith.constant 0 : i32
    return %c0_i32, %c0_i32_0 : i32, i32
  }
  func.func @transform_6(%arg0: i32) -> (i32, i32) {
    %c0_i32 = arith.constant 0 : i32
    %c0_i32_0 = arith.constant 0 : i32
    %c0_i32_1 = arith.constant 0 : i32
    return %c0_i32, %c0_i32_0 : i32, i32
  }
  func.func @transform_7(%arg0: i32) -> (i32, i32) {
    %c0_i32 = arith.constant 0 : i32
    %c0_i32_0 = arith.constant 0 : i32
    %c0_i32_1 = arith.constant 0 : i32
    return %c0_i32, %c0_i32_0 : i32, i32
  }
  func.func @transform_8(%arg0: i32) -> (i32, i32) {
    %c0_i32 = arith.constant 0 : i32
    %c0_i32_0 = arith.constant 0 : i32
    %c0_i32_1 = arith.constant 0 : i32
    return %c0_i32, %c0_i32_0 : i32, i32
  }
  func.func @transform_9(%arg0: i32) -> (i32, i32) {
    %c0_i32 = arith.constant 0 : i32
    %c0_i32_0 = arith.constant 0 : i32
    %c0_i32_1 = arith.constant 0 : i32
    return %c0_i32, %c0_i32_0 : i32, i32
  }
  func.func @transform_10(%arg0: i32) -> (i32, i32) {
    %c0_i32 = arith.constant 0 : i32
    %c0_i32_0 = arith.constant 0 : i32
    %c0_i32_1 = arith.constant 0 : i32
    return %c0_i32, %c0_i32_0 : i32, i32
  }
  func.func @transform_11(%arg0: i32) -> (i32, i32) {
    %c0_i32 = arith.constant 0 : i32
    %c0_i32_0 = arith.constant 0 : i32
    %c0_i32_1 = arith.constant 0 : i32
    return %c0_i32, %c0_i32_0 : i32, i32
  }
  func.func @transform_12(%arg0: i32) -> (i32, i32) {
    %c0_i32 = arith.constant 0 : i32
    %c0_i32_0 = arith.constant 0 : i32
    %c0_i32_1 = arith.constant 0 : i32
    return %c0_i32, %c0_i32_0 : i32, i32
  }
  func.func @transform_13(%arg0: i32) -> (i32, i32, i32) {
    %c0_i32 = arith.constant 0 : i32
    %c0_i32_0 = arith.constant 0 : i32
    %c0_i32_1 = arith.constant 0 : i32
    return %arg0, %c0_i32, %c0_i32_0 : i32, i32, i32
  }
}

module attributes {stable_mosaic.version = 11 : i64} {
  func.func @_linear_kernel(%arg0: memref<2x256xf32, #tpu.memory_space<vmem>>, %arg1: memref<256x4xf32, #tpu.memory_space<vmem>>, %arg2: memref<1x4xf32, #tpu.memory_space<vmem>>, %arg3: memref<2x4xf32, #tpu.memory_space<vmem>>) attributes {dimension_semantics = [], scalar_prefetch = 0 : i64, scratch_operands = 0 : i64, tpu.core_type = #tpu.core_type<tc>} {
    %c0 = arith.constant 0 : index
    %c0_0 = arith.constant 0 : index
    %0 = vector.load %arg0[%c0, %c0_0] : memref<2x256xf32, #tpu.memory_space<vmem>>, vector<2x256xf32>
    %c0_1 = arith.constant 0 : index
    %c0_2 = arith.constant 0 : index
    %1 = vector.load %arg1[%c0_1, %c0_2] : memref<256x4xf32, #tpu.memory_space<vmem>>, vector<256x4xf32>
    %cst = arith.constant dense<0.000000e+00> : vector<2x4xf32>
    %2 = tpu.matmul %0, %1, %cst {dimension_numbers = #tpu.dot_dimension_numbers<[1], [0], [0], [1], [0, 0, 1, 1], [], []>} : vector<2x256xf32>, vector<256x4xf32>, vector<2x4xf32> -> vector<2x4xf32>
    %c0_3 = arith.constant 0 : index
    %c0_4 = arith.constant 0 : index
    %3 = vector.load %arg2[%c0_3, %c0_4] : memref<1x4xf32, #tpu.memory_space<vmem>>, vector<1x4xf32>
    %4 = vector.broadcast %3 : vector<1x4xf32> to vector<2x4xf32>
    %5 = arith.addf %2, %4 : vector<2x4xf32>
    %c0_5 = arith.constant 0 : index
    %c0_6 = arith.constant 0 : index
    %6 = vector.load %arg3[%c0_5, %c0_6] : memref<2x4xf32, #tpu.memory_space<vmem>>, vector<2x4xf32>
    tpu.vector_store %arg3[%c0_5, %c0_6], %5 {strides = array<i32>} : memref<2x4xf32, #tpu.memory_space<vmem>>, vector<2x4xf32>,
    return
  }
}

</mosaic_0001>

<bundles_post_ra>
// kernel: gtn_channel_wise_forward.4
= control target key start
LH: loop header
LB: loop body
LE: loop exit
PB: predicated region body
PF: predicated region fallthrough
CT: control target
= control target key end

     0   :  { %vm25_vm0 = vcmask 130048   ;;  %vm107_vm1 = vcmask 261120   ;;  %s173_s1 = inlined_call_operand.vmem [shape: f32[16,32], index: 1, kind: input, shape index: {}]   ;;  %s174_s0 = inlined_call_operand.vmem [shape: f32[16,16], index: 0, kind: input, shape index: {}]   ;;  %s175_s2 = inlined_call_operand.vmem [shape: f32[1,32], index: 2, kind: input, shape index: {}]   ;;  %s176_s3 = inlined_call_operand.vmem [shape: f32[16,32], index: 3, kind: output, shape index: {}]  }
   0x1   :  { %v16_v0 = vld [vmem:[%s173_s1] sm:$0xff]  ;;  %v17_v1 = vld [vmem:[%s173_s1 + $0x8] sm:$0xff] }
   0x2   :  { %v14_v2 = vld [vmem:[%s174_s0] sm:$0xff]  ;;  %v128_v3 = vpack.c.bf16 %v17_v1, %v16_v0  ;;  %v15_v4 = vld [vmem:[%s174_s0 + $0x8] sm:$0xff] }
   0x3   :  { %125 = vmatprep.mubr.msk.f32.mxu0 %vm25_vm0, %v14_v2  ;;  %v114_v5 = vld [vmem:[%s175_s2] ss:$0 sm:$0xff] }
   0x4   :  { %129 = vmatprep.subr.bf16.mxu0 %v128_v3 }
   0x5   :  { %131 = vmatpush3.bf16.msra.mxu0 %v128_v3 }
   0x8   :  { %126 = vmatmul.mubr.msk.f32.vlgmr.msra.gmra.mrb[0].mxu0 %vm25_vm0, %v15_v4 }
  0xdb   :  { %v127_v6 = vpop.f32.mrb[0].mxu0 }
  0xdc   :  { %v104_v7 = vadd.f32 %v127_v6, %v114_v5  ;;  %v98_v8 = vpop.f32.mrb[1].mxu0 }
  0xdd   :  { %v99_v9 = vadd.f32 %v114_v5, %v98_v8 }
  0xde   :  { %109 = vst.msk [vmem:[%s176_s3 + $0x8] sm:$0xff] %vm107_vm1, %v104_v7 }
  0xdf   :  { %108 = vst.msk [vmem:[%s176_s3] sm:$0xff] %vm107_vm1, %v99_v9 }

// kernel: gtn_channel_wise_forward.5
= control target key start
LH: loop header
LB: loop body
LE: loop exit
PB: predicated region body
PF: predicated region fallthrough
CT: control target
= control target key end

     0   :  { %s1911_s25 = smov 0   ;;  %s2108_s0 = inlined_call_operand.vmem [shape: f32[2,8,32], index: 0, kind: input, shape index: {}]   ;;  %s2109_s1 = inlined_call_operand.vmem [shape: f32[32,96], index: 1, kind: input, shape index: {}]   ;;  %s2110_s2 = inlined_call_operand.vmem [shape: f32[1,96], index: 2, kind: input, shape index: {}]   ;;  %s2111_s3 = inlined_call_operand.vmem [shape: f32[32,32], index: 3, kind: input, shape index: {}]   ;;  %s2112_s4 = inlined_call_operand.vmem [shape: f32[1,32], index: 4, kind: input, shape index: {}]   ;;  %s2113_s5 = inlined_call_operand.vmem [shape: f32[1,32], index: 5, kind: input, shape index: {}]   ;;  %s2114_s6 = inlined_call_operand.vmem [shape: f32[1,32], index: 6, kind: input, shape index: {}]   ;;  %s2115_s7 = inlined_call_operand.vmem [shape: f32[32,64], index: 7, kind: input, shape index: {}]   ;;  %s2116_s8 = inlined_call_operand.vmem [shape: f32[1,64], index: 8, kind: input, shape index: {}]   ;;  %s2117_s9 = inlined_call_operand.vmem [shape: f32[64,32], index: 9, kind: input, shape index: {}]   ;;  %s2118_s10 = inlined_call_operand.vmem [shape: f32[1,32], index: 10, kind: input, shape index: {}]   ;;  %s2119_s11 = inlined_call_operand.vmem [shape: f32[1,32], index: 11, kind: input, shape index: {}]   ;;  %s2120_s12 = inlined_call_operand.vmem [shape: f32[1,32], index: 12, kind: input, shape index: {}]   ;;  %s2121_s13 = inlined_call_operand.vmem [shape: f32[2,8,32], index: 13, kind: output, shape index: {}]  }
   0x1 LB: > { %s1576_s26 = sadd.s32 4294967295, %s1822_s25   ;;  %p1580_p0 = scmp.ge.s32.totalorder %s1822_s25, 1  ;;  %s1822_s25 = sphi %s1911_s25, %s23_s25  }
   0x2   : > { %p386_p1 = scmp.lt.s32.totalorder %s1822_s25, 3 }
   0x4   : > { %p387_p2 = pnand %p1580_p0, %p386_p1 }
   0x5   : > { %v437_v0 = vld [vmem:[%s2109_s1] sm:$0xff] (!%p387_p2)  ;;  %v438_v1 = vld [vmem:[%s2109_s1 + $0x8] sm:$0xff] (!%p387_p2)  ;;  %v439_v2 = vld [vmem:[%s2109_s1 + $0x10] sm:$0xff] (!%p387_p2)  ;;  %v1824_v3 = vmov (!%p387_p2), 0.0|0.0   ;;  %vm1825_vm0 = vmmov (!%p387_p2), 0   ;;  %v1826_v6 = vmov (!%p387_p2), 0.0  }
   0x6   : > { %390 = sbr.rel (%p387_p2) target bundleno = 2537 (0x9e9), region = 72  ;;  %1741 = vmatprep.subr.bf16.mxu1 (!%p387_p2), %v1824_v3  ;;  %v1742_v4 = vpack.c.bf16 (!%p387_p2), %v438_v1, %v437_v0  ;;  %v440_v5 = vld [vmem:[%s2109_s1 + $0x18] sm:$0xff] (!%p387_p2)  ;;  %1657 = vmatprep.mubr.msk.f32.mxu1 (!%p387_p2), %vm1825_vm0, %v1826_v6  ;;  %p428_p3 = scmp.lt.s32.totalorder (!%p387_p2), %s1576_s26, 1  ;;  %vm448_vm1 = vcmask (!%p387_p2), 261120   ;;  %v1583_v9 = vld [vmem:[%s2110_s2] ss:$0 sm:$0xff] (!%p387_p2) }
   0x7   : > { %1670 = vmatprep.subr.mxu0 (!%p387_p2), %v1826_v6  ;;  %1672 = vmatprep.mubr.msk.f32.mxu0 (!%p387_p2), %vm1825_vm0, %v1826_v6  ;;  %v1745_v7 = vpack.c.bf16 (!%p387_p2), %v440_v5, %v439_v2  ;;  %s1827_s24 = smov (!%p387_p2), 120   ;;  %s1828_s27 = smov (!%p387_p2), 96   ;;  %vm525_vm2 = vcmask (!%p387_p2), 64512   ;;  %vm1199_vm3 = vcmask (!%p387_p2), 130048   ;;  %vm1201_vm4 = vcmask (!%p387_p2), 195584  }
   0x8   : > { %1743 = vmatpush3.bf16.msra.mxu1 (!%p387_p2), %v1742_v4  ;;  %s1829_s28 = smov (!%p387_p2), 80   ;;  %s1830_s29 = smov (!%p387_p2), 88   ;;  %vm1418_vm5 = vcmask (!%p387_p2), 523264  }
   0x9   : > { %1744 = vmatprep.subr.bf16.mxu1 (!%p387_p2), %v1824_v3  ;;  %s1831_s30 = smov (!%p387_p2), 72   ;;  %s1832_s14 = smov (!%p387_p2), 112  }
   0xa   : > { %s1833_s15 = smov (!%p387_p2), 104   ;;  %s1834_s16 = smov (!%p387_p2), 56  }
   0xb   : > { %s1835_s17 = smov (!%p387_p2), 64   ;;  %s1836_s19 = smov (!%p387_p2), 48  }
   0xc   : > { %1746 = vmatpush3.bf16.msra.mxu1 (!%p387_p2), %v1745_v7  ;;  %s1837_s20 = smov (!%p387_p2), 40  }
   0xd   : > { %s2123_s26 = smov (!%p428_p3, %s1576_s26), 1  ;;  %1660 = vmatprep.subr.mxu1 %v1826_v6 }
   0xe   : > { %s1581_s18 = sshll.u32 %s2123_s26, 3 }
   0xf   : > { %s431_s21 = scalar_lea.vmem %s2108_s0, %s1581_s18 }
  0x10   : > { %v1946_v8 = vld [vmem:[%s431_s21] sm:$0xff] }
  0x11   : > { %1658 = vmatmul.mubr.msk.f32.vlgmr.msra.gmra.mrb[0].mxu1 %vm448_vm1, %v1946_v8 }
  0x12   : > { %1662 = vmatprep.mubr.msk.f32.mxu1 %vm1825_vm0, %v1826_v6 }
  0xe4   : > { %v518_v10 = vpop.f32.mrb[0].mxu1 }
  0xe5   : > { %v1956_v11 = vadd.f32 %v1583_v9, %v518_v10  ;;  %v1659_v12 = vpop.f32.mrb[1].mxu1 }
  0xe6   : > { %v1204_v12 = vld [vmem:[%s2111_s3 + $0x8] sm:$0xff] }
  0xe7   : > { %688 = vrot.lane.b32.xlu1 %v1956_v11, %s1827_s24  ;;  %523 = vrot.lane.b32.xlu0 %v1956_v11, %s1828_s27  ;;  %s1838_s27 = smov 8  }
  0xeb   : > { %856 = vrot.lane.b32.xlu1 %v1956_v11, %s1829_s28  ;;  %690 = vrot.lane.b32.xlu0 %v1956_v11, %s1830_s29 }
  0xef   : > { %1022 = vrot.lane.b32.xlu1 %v1956_v11, %s1831_s30  ;;  %854 = vrot.lane.b32.xlu0 %v1956_v11, %s1832_s14 }
  0xf3   : > { %1020 = vrot.lane.b32.xlu0 %v1956_v11, %s1833_s15  ;;  %s1839_s15 = smov 16  }
 0x159   : > { %v689_v13 = vpop.permute.xlu1 %688  ;;  %v524_v14 = vpop.permute.xlu0 %523 }
 0x15a   : > { %1661 = vmatpush3.xpose.msk.msra.mxu1 %vm525_vm2, %v524_v14 }
 0x15b   : > { %1665 = vmatprep.subr.mxu1 %v1826_v6 }
 0x15d   : > { %1663 = vmatmul.mubr.msk.f32.vlgmr.msra.gmra.mrb[2].mxu1 %vm525_vm2, %v1956_v11  ;;  %v691_v15 = vpop.permute.xlu0 %690  ;;  %v857_v16 = vpop.permute.xlu1 %856 }
 0x15e   : > { %1671 = vmatpush3.xpose.msk.msra.mxu0 %vm525_vm2, %v691_v15  ;;  %1667 = vmatprep.mubr.msk.f32.mxu1 %vm1825_vm0, %v1826_v6 }
 0x15f   : > { %1680 = vmatprep.subr.mxu0 %v1826_v6 }
 0x161   : > { %1673 = vmatmul.mubr.msk.f32.vlgmr.msra.gmra.mrb[0].mxu0 %vm525_vm2, %v689_v13  ;;  %v855_v17 = vpop.permute.xlu0 %854  ;;  %v1023_v18 = vpop.permute.xlu1 %1022 }
 0x162   : > { %1681 = vmatpush3.xpose.msk.msra.mxu0 %vm525_vm2, %v857_v16  ;;  %1682 = vmatprep.mubr.msk.f32.mxu0 %vm1825_vm0, %v1826_v6 }
 0x163   : > { %1690 = vmatprep.subr.mxu0 %v1826_v6 }
 0x165   : > { %1683 = vmatmul.mubr.msk.f32.vlgmr.msra.gmra.mrb[2].mxu0 %vm525_vm2, %v855_v17  ;;  %v1021_v19 = vpop.permute.xlu0 %1020 }
 0x166   : > { %1691 = vmatpush3.xpose.msk.msra.mxu0 %vm525_vm2, %v1023_v18  ;;  %1692 = vmatprep.mubr.msk.f32.mxu0 %vm1825_vm0, %v1826_v6  ;;  %v1205_v18 = vld [vmem:[%s2111_s3 + $0x10] sm:$0xff] }
 0x167   : > { %1747 = vmatprep.subr.bf16.mxu0 %v1824_v3 }
 0x169   : > { %1693 = vmatmul.mubr.msk.f32.vlgmr.msra.gmra.mrb[4].mxu0 %vm525_vm2, %v1021_v19  ;;  %v1206_v19 = vld [vmem:[%s2111_s3 + $0x18] sm:$0xff] }
 0x16a   : > { %1708 = vmatprep.mubr.msk.f32.mxu0 %vm1825_vm0, %v1826_v6 }
 0x230   : > { %v596_v20 = vpop.f32.mrb[2].mxu1 }
 0x231   : > { %v600_v21 = vmul.f32 0.35355338, %v596_v20  ;;  %v1664_v22 = vpop.f32.mrb[3].mxu1  ;;  %v1751_v20 = vpack.c.bf16 %v1206_v19, %v1205_v18 }
 0x233   : > { %v601_v23 = vsel %vm525_vm2, %v600_v21, -inf }
 0x234   : > { %v762_v24 = vpop.f32.mrb[0].mxu0  ;;  %602 = vmax.xlane.f32.xlu1 %v601_v23 }
 0x235   : > { %v766_v25 = vmul.f32 0.35355338, %v762_v24  ;;  %v1674_v26 = vpop.f32.mrb[1].mxu0 }
 0x237   : > { %v767_v27 = vsel %vm525_vm2, %v766_v25, -inf }
 0x238   : > { %768 = vmax.xlane.f32.xlu0 %v767_v27  ;;  %v928_v28 = vpop.f32.mrb[2].mxu0 }
 0x239   : > { %v932_v29 = vmul.f32 0.35355338, %v928_v28  ;;  %v1684_v30 = vpop.f32.mrb[3].mxu0 }
 0x23b   : > { %v933_v31 = vsel %vm525_vm2, %v932_v29, -inf }
 0x23c   : > { %934 = vmax.xlane.f32.xlu0 %v933_v31  ;;  %v1094_v32 = vpop.f32.mrb[4].mxu0  ;;  %v1597_v31 = vld [vmem:[%s2112_s4] ss:$0 sm:$0xff] }
 0x23d   : > { %v1098_v33 = vmul.f32 0.35355338, %v1094_v32  ;;  %v1694_v34 = vpop.f32.mrb[5].mxu0 }
 0x23f   : > { %v1099_v35 = vsel %vm525_vm2, %v1098_v33, -inf }
 0x240   : > { %1100 = vmax.xlane.f32.xlu1 %v1099_v35 }
 0x251   : > { %778 = vrot.lane.b32.xlu1 %v1956_v11, %s1834_s16  ;;  %s1840_s16 = smov 24  }
 0x2c1   : > { %v603_v36 = vpop.xlane.xlu1 %602 }
 0x2c2   : > { %v604_v37 = vsub.f32 %v600_v21, %v603_v36 }
 0x2c4   : > { %v605_v38 = vmul.f32 1.442695, %v604_v37 }
 0x2c5   : > { %v769_v39 = vpop.xlane.xlu0 %768 }
 0x2c6   : > { %1796 = vpow2.f32 %v605_v38  ;;  %v770_v40 = vsub.f32 %v766_v25, %v769_v39 }
 0x2c8   : > { %v771_v41 = vmul.f32 1.442695, %v770_v40 }
 0x2c9   : > { %v935_v51 = vpop.xlane.xlu0 %934 }
 0x2ca   : > { %1798 = vpow2.f32 %v771_v41  ;;  %v936_v52 = vsub.f32 %v932_v29, %v935_v51 }
 0x2cc   : > { %v937_v53 = vmul.f32 1.442695, %v936_v52  ;;  %v1407_v52 = vld [vmem:[%s2117_s9 + $0x20] sm:$0xff] }
 0x2cd   : > { %v1101_v42 = vpop.xlane.xlu1 %1100 }
 0x2ce   : > { %v1102_v43 = vsub.f32 %v1098_v33, %v1101_v42  ;;  %v1319_v42 = vld [vmem:[%s2115_s7 + $0x8] sm:$0xff] }
 0x2d0   : > { %v1797_v44 = vpop.eup %1796  ;;  %v1103_v45 = vmul.f32 1.442695, %v1102_v43 }
 0x2d1   : > { %v607_v46 = vsel %vm525_vm2, %v1797_v44, 0.0  ;;  %v779_v56 = vpop.permute.xlu1 %778 }
 0x2d2   : > { %1800 = vpow2.f32 %v1103_v45  ;;  %608 = vadd.xlane.f32.xlu0 %v607_v46  ;;  %v1403_v46 = vld [vmem:[%s2117_s9] sm:$0xff] }
 0x2d3   : > { %1802 = vpow2.f32 %v937_v53  ;;  %v1408_v53 = vld [vmem:[%s2117_s9 + $0x28] sm:$0xff] }
 0x2d4   : > { %v1799_v47 = vpop.eup %1798 }
 0x2d5   : > { %v773_v48 = vsel %vm525_vm2, %v1799_v47, 0.0 }
 0x2d6   : > { %774 = vadd.xlane.f32.xlu1 %v773_v48  ;;  %v1405_v48 = vld [vmem:[%s2117_s9 + $0x10] sm:$0xff] }
 0x2dc   : > { %v1801_v49 = vpop.eup %1800 }
 0x2dd   : > { %v1105_v50 = vsel %vm525_vm2, %v1801_v49, 0.0  ;;  %v1803_v54 = vpop.eup %1802 }
 0x2de   : > { %1106 = vadd.xlane.f32.xlu1 %v1105_v50  ;;  %v939_v55 = vsel %vm525_vm2, %v1803_v54, 0.0  ;;  %v1406_v50 = vld [vmem:[%s2117_s9 + $0x18] sm:$0xff] }
 0x2df   : > { %v1763_v51 = vpack.c.bf16 %v1406_v50, %v1405_v48 }
 0x2e8   : > { %612 = vrot.lane.b32.xlu0 %v1956_v11, %s1835_s17 }
 0x2ef   : > { %944 = vrot.lane.b32.xlu1 %v1956_v11, %s1836_s19 }
 0x307   : > { %940 = vadd.xlane.f32.xlu0 %v939_v55 }
 0x31d   : > { %1110 = vrot.lane.b32.xlu0 %v1956_v11, %s1837_s20  ;;  %v1203_v11 = vld [vmem:[%s2111_s3] sm:$0xff] }
 0x31e   : > { %v1748_v13 = vpack.c.bf16 %v1204_v12, %v1203_v11 }
 0x320   : > { %1749 = vmatpush3.bf16.msra.mxu0 %v1748_v13 }
 0x321   : > { %1750 = vmatprep.subr.bf16.mxu0 %v1824_v3 }
 0x324   : > { %1752 = vmatpush3.bf16.msra.mxu0 %v1751_v20 }
 0x325   : > { %1759 = vmatprep.subr.bf16.mxu0 %v1824_v3 }
 0x35f   : > { %v609_v57 = vpop.xlane.xlu0 %608 }
 0x360   : > { %1804 = vrcp.f32 %v609_v57 }
 0x363   : > { %v613_v58 = vpop.permute.xlu0 %612  ;;  %v775_v59 = vpop.xlane.xlu1 %774 }
 0x364   : > { %1806 = vrcp.f32 %v775_v59  ;;  %1666 = vmatpush3.msra.mxu1 %v613_v58  ;;  %v1599_v59 = vld [vmem:[%s2113_s5] ss:$0 sm:$0xff] }
 0x365   : > { %1675 = vmatprep.subr.mxu1 %v1826_v6 }
 0x36a   : > { %v1805_v60 = vpop.eup %1804 }
 0x36b   : > { %v611_v61 = vmul.f32 %v1805_v60, %v1797_v44  ;;  %v1107_v62 = vpop.xlane.xlu1 %1106  ;;  %v1321_v44 = vld [vmem:[%s2115_s7 + $0x18] sm:$0xff] }
 0x36d   : > { %1668 = vmatmul.mubr.msk.f32.vlgmr.msra.gmra.mrb[4].mxu1 %vm525_vm2, %v611_v61  ;;  %v1600_v61 = vld [vmem:[%s2114_s6] ss:$0 sm:$0xff] }
 0x36e   : > { %v1807_v63 = vpop.eup %1806  ;;  %1676 = vmatpush3.msra.mxu1 %v779_v56  ;;  %1677 = vmatprep.mubr.msk.f32.mxu1 %vm1825_vm0, %v1826_v6 }
 0x36f   : > { %v777_v0 = vmul.f32 %v1807_v63, %v1799_v47  ;;  %v945_v1 = vpop.permute.xlu1 %944  ;;  %1685 = vmatprep.subr.mxu1 %v1826_v6  ;;  %v1404_v47 = vld [vmem:[%s2117_s9 + $0x8] sm:$0xff] }
 0x371   : > { %1678 = vmatmul.mubr.msk.f32.vlgmr.msra.gmra.mrb[6].mxu1 %vm525_vm2, %v777_v0  ;;  %v1410_v0 = vld [vmem:[%s2117_s9 + $0x38] sm:$0xff] }
 0x372   : > { %1686 = vmatpush3.msra.mxu1 %v945_v1  ;;  %1687 = vmatprep.mubr.msk.f32.mxu1 %vm1825_vm0, %v1826_v6 }
 0x373   : > { %1695 = vmatprep.subr.mxu1 %v1826_v6 }
 0x394   : > { %v941_v2 = vpop.xlane.xlu0 %940 }
 0x395   : > { %1808 = vrcp.f32 %v941_v2  ;;  %v1601_v2 = vld [vmem:[%s2116_s8] ss:$0 sm:$0xff] }
 0x396   : > { %1810 = vrcp.f32 %v1107_v62 }
 0x398   : > { %v1111_v9 = vpop.permute.xlu0 %1110 }
 0x39f   : > { %v1809_v4 = vpop.eup %1808 }
 0x3a0   : > { %v943_v5 = vmul.f32 %v1809_v4, %v1803_v54  ;;  %v1811_v7 = vpop.eup %1810  ;;  %v1766_v54 = vpack.c.bf16 %v1408_v53, %v1407_v52 }
 0x3a1   : > { %v1109_v10 = vmul.f32 %v1811_v7, %v1801_v49  ;;  %v1760_v49 = vpack.c.bf16 %v1404_v47, %v1403_v46 }
 0x3a2   : > { %1688 = vmatmul.mubr.msk.f32.vlgmr.msra.gmra.mrb[8].mxu1 %vm525_vm2, %v943_v5 }
 0x3a3   : > { %1696 = vmatpush3.msra.mxu1 %v1111_v9  ;;  %1697 = vmatprep.mubr.msk.f32.mxu1 %vm1825_vm0, %v1826_v6 }
 0x3a4   : > { %1753 = vmatprep.subr.bf16.mxu1 %v1824_v3 }
 0x3a6   : > { %1698 = vmatmul.mubr.msk.f32.vlgmr.msra.gmra.mrb[10].mxu1 %vm525_vm2, %v1109_v10  ;;  %v1603_v10 = vld [vmem:[%s2118_s10] ss:$0 sm:$0xff] }
 0x3a7   : > { %1719 = vmatprep.mubr.msk.f32.mxu1 %vm1825_vm0, %v1826_v6 }
 0x440   : > { %v684_v14 = vpop.f32.mrb[4].mxu1 }
 0x441   : > { %v1669_v15 = vpop.f32.mrb[5].mxu1 }
 0x444   : > { %v850_v16 = vpop.f32.mrb[6].mxu1 }
 0x445   : > { %1187 = vrot.lane.b32.xlu1 %v850_v16, %s1838_s27  ;;  %v1679_v17 = vpop.f32.mrb[7].mxu1 }
 0x475   : > { %v1016_v21 = vpop.f32.mrb[8].mxu1 }
 0x476   : > { %1191 = vrot.lane.b32.xlu0 %v1016_v21, %s1839_s15  ;;  %v1689_v22 = vpop.f32.mrb[9].mxu1  ;;  %s435_s15 = scalar_lea.vmem %s2121_s13, %s1581_s18 }
 0x479   : > { %v1182_v23 = vpop.f32.mrb[10].mxu1 }
 0x47a   : > { %1195 = vrot.lane.b32.xlu1 %v1182_v23, %s1840_s16  ;;  %v1699_v24 = vpop.f32.mrb[11].mxu1 }
 0x4b7   : > { %v1188_v25 = vpop.permute.xlu1 %1187 }
 0x4b8   : > { %v1198_v27 = vsel %vm525_vm2, %v684_v14, %v1188_v25  ;;  %v1605_v25 = vld [vmem:[%s2119_s11] ss:$0 sm:$0xff] }
 0x4e8   : > { %v1192_v26 = vpop.permute.xlu0 %1191 }
 0x4e9   : > { %v1200_v28 = vsel %vm1199_vm3, %v1198_v27, %v1192_v26  ;;  %v1606_v27 = vld [vmem:[%s2120_s12] ss:$0 sm:$0xff] }
 0x4ec   : > { %v1196_v29 = vpop.permute.xlu1 %1195 }
 0x4ed   : > { %v1202_v30 = vsel %vm1201_vm4, %v1200_v28, %v1196_v29 }
 0x4ee   : > { %1709 = vmatmul.mubr.msk.f32.vlgmr.msra.gmra.mrb[6].mxu0 %vm448_vm1, %v1202_v30 }
 0x4ef   : > { %1738 = vmatprep.mubr.msk.f32.mxu0 %vm1825_vm0, %v1826_v6  ;;  %v1318_v6 = vld [vmem:[%s2115_s7] sm:$0xff]  ;;  %1761 = vmatpush3.bf16.msra.mxu0 %v1760_v49 }
 0x4f0   : > { %v1754_v43 = vpack.c.bf16 %v1319_v42, %v1318_v6  ;;  %1762 = vmatprep.subr.bf16.mxu0 %v1824_v3 }
 0x4f2   : > { %1755 = vmatpush3.bf16.msra.mxu1 %v1754_v43 }
 0x4f3   : > { %1756 = vmatprep.subr.bf16.mxu1 %v1824_v3  ;;  %1764 = vmatpush3.bf16.msra.mxu0 %v1763_v51 }
 0x4f4   : > { %1765 = vmatprep.subr.bf16.mxu0 %v1824_v3 }
 0x4f7   : > { %1767 = vmatpush3.bf16.msra.mxu0 %v1766_v54 }
 0x4f8   : > { %1768 = vmatprep.subr.bf16.mxu0 %v1824_v3  ;;  %v1409_v3 = vld [vmem:[%s2117_s9 + $0x30] sm:$0xff] }
 0x4f9   : > { %v1769_v1 = vpack.c.bf16 %v1410_v0, %v1409_v3 }
 0x4fb   : > { %1770 = vmatpush3.bf16.msra.mxu0 %v1769_v1 }
 0x5c1   : > { %v1283_v32 = vpop.f32.mrb[6].mxu0 }
 0x5c2   : > { %v1284_v33 = vadd.f32 %v1597_v31, %v1283_v32  ;;  %v1710_v34 = vpop.f32.mrb[7].mxu0 }
 0x5c4   : > { %v1287_v35 = vadd.f32 %v1284_v33, %v1946_v8  ;;  %v1320_v8 = vld [vmem:[%s2115_s7 + $0x10] sm:$0xff] }
 0x5c5   : > { %v1757_v45 = vpack.c.bf16 %v1321_v44, %v1320_v8 }
 0x5c6   : > { %v1290_v36 = vsel %vm448_vm1, %v1287_v35, 0.0 }
 0x5c7   : > { %1291 = vadd.xlane.f32.xlu0 %v1290_v36  ;;  %1758 = vmatpush3.bf16.msra.mxu1 %v1757_v45 }
 0x654   : > { %v1292_v37 = vpop.xlane.xlu0 %1291 }
 0x655   : > { %v1294_v38 = vmul.f32 0.03125, %v1292_v37 }
 0x657   : > { %v1295_v39 = vsub.f32 %v1287_v35, %v1294_v38 }
 0x659   : > { %v1296_v40 = vmul.f32 %v1295_v39, %v1295_v39 }
 0x65b   : > { %v1297_v41 = vsel %vm448_vm1, %v1296_v40, 0.0 }
 0x65c   : > { %1298 = vadd.xlane.f32.xlu1 %v1297_v41 }
 0x6e9   : > { %v1299_v55 = vpop.xlane.xlu1 %1298 }
 0x6ea   : > { %v1300_v56 = vmul.f32 0.03125, %v1299_v55 }
 0x6ec   : > { %v1301_v57 = vadd.f32 1e-05, %v1300_v56 }
 0x6ee   : > { %1812 = vrsqrt.f32 %v1301_v57 }
 0x6f8   : > { %v1813_v58 = vpop.eup %1812 }
 0x6f9   : > { %v1303_v60 = vmul.f32 %v1813_v58, %v1295_v39 }
 0x6fb   : > { %v1310_v62 = vmul.f32 %v1599_v59, %v1303_v60 }
 0x6fd   : > { %v1317_v63 = vadd.f32 %v1600_v61, %v1310_v62 }
 0x6ff   : > { %1720 = vmatmul.mubr.msk.f32.vlgmr.msra.gmra.mrb[12].mxu1 %vm448_vm1, %v1317_v63 }
 0x7d2   : > { %v1398_v4 = vpop.f32.mrb[12].mxu1 }
 0x7d3   : > { %v1399_v5 = vadd.f32 %v1601_v2, %v1398_v4  ;;  %v1721_v7 = vpop.f32.mrb[13].mxu1 }
 0x7d5   : > { %v1402_v9 = vmax.f32 %v1399_v5, 0.0 }
 0x7d7   : > { %1739 = vmatmul.mubr.msk.f32.vlgmr.msra.gmra.mrb[8].mxu0 %vm1418_vm5, %v1402_v9 }
 0x8aa   : > { %v1488_v11 = vpop.f32.mrb[8].mxu0 }
 0x8ab   : > { %v1489_v12 = vadd.f32 %v1603_v10, %v1488_v11  ;;  %v1740_v13 = vpop.f32.mrb[9].mxu0 }
 0x8ad   : > { %v1492_v14 = vadd.f32 %v1489_v12, %v1317_v63 }
 0x8af   : > { %v1495_v15 = vsel %vm448_vm1, %v1492_v14, 0.0 }
 0x8b0   : > { %1496 = vadd.xlane.f32.xlu0 %v1495_v15 }
 0x93d   : > { %v1497_v16 = vpop.xlane.xlu0 %1496 }
 0x93e   : > { %v1498_v17 = vmul.f32 0.03125, %v1497_v16 }
 0x940   : > { %v1499_v18 = vsub.f32 %v1492_v14, %v1498_v17 }
 0x942   : > { %v1500_v19 = vmul.f32 %v1499_v18, %v1499_v18 }
 0x944   : > { %v1501_v20 = vsel %vm448_vm1, %v1500_v19, 0.0 }
 0x945   : > { %1502 = vadd.xlane.f32.xlu0 %v1501_v20 }
 0x9d2   : > { %v1503_v21 = vpop.xlane.xlu0 %1502 }
 0x9d3   : > { %v1504_v22 = vmul.f32 0.03125, %v1503_v21 }
 0x9d5   : > { %v1505_v23 = vadd.f32 1e-05, %v1504_v22 }
 0x9d7   : > { %1814 = vrsqrt.f32 %v1505_v23 }
 0x9e1   : > { %v1815_v24 = vpop.eup %1814 }
 0x9e2   : > { %v1507_v26 = vmul.f32 %v1815_v24, %v1499_v18 }
 0x9e4   : > { %v1514_v28 = vmul.f32 %v1605_v25, %v1507_v26 }
 0x9e6   : > { %v1521_v29 = vadd.f32 %v1606_v27, %v1514_v28 }
 0x9e8   : > { %1522 = vst.msk [vmem:[%s435_s15] sm:$0xff] %vm448_vm1, %v1521_v29 }
 0x9e9 PF: > { %s23_s25 = sadd.s32 1, %s1822_s25  }
 0x9ea   : > { %p20_p4 = scmp.ge.s32.totalorder %s23_s25, 4  }
 0x9ec   :  { %22 = sbr.rel (!%p20_p4) target bundleno = 1 (0x1), region = 102 }

// kernel: gtn_channel_wise_forward.6
= control target key start
LH: loop header
LB: loop body
LE: loop exit
PB: predicated region body
PF: predicated region fallthrough
CT: control target
= control target key end

     0   :  { %s2414_s0 = inlined_call_operand.vmem [shape: f32[2,8,32], index: 0, kind: input, shape index: {}]   ;;  %s2415_s1 = inlined_call_operand.vmem [shape: f32[32,96], index: 1, kind: input, shape index: {}]   ;;  %s2416_s2 = inlined_call_operand.vmem [shape: f32[1,96], index: 2, kind: input, shape index: {}]   ;;  %s2417_s3 = inlined_call_operand.vmem [shape: f32[32,32], index: 3, kind: input, shape index: {}]   ;;  %s2418_s4 = inlined_call_operand.vmem [shape: f32[1,32], index: 4, kind: input, shape index: {}]   ;;  %s2419_s5 = inlined_call_operand.vmem [shape: f32[1,32], index: 5, kind: input, shape index: {}]   ;;  %s2420_s6 = inlined_call_operand.vmem [shape: f32[1,32], index: 6, kind: input, shape index: {}]   ;;  %s2421_s7 = inlined_call_operand.vmem [shape: f32[32,64], index: 7, kind: input, shape index: {}]   ;;  %s2422_s8 = inlined_call_operand.vmem [shape: f32[1,64], index: 8, kind: input, shape index: {}]   ;;  %s2423_s9 = inlined_call_operand.vmem [shape: f32[64,32], index: 9, kind: input, shape index: {}]   ;;  %s2424_s10 = inlined_call_operand.vmem [shape: f32[1,32], index: 10, kind: input, shape index: {}]   ;;  %s2425_s11 = inlined_call_operand.vmem [shape: f32[1,32], index: 11, kind: input, shape index: {}]   ;;  %s2426_s12 = inlined_call_operand.vmem [shape: f32[1,32], index: 12, kind: input, shape index: {}]   ;;  %s2427_s13 = inlined_call_operand.vmem [shape: f32[2,8,32], index: 13, kind: output, shape index: {0}]   ;;  %s2428_s14 = inlined_call_operand.hbm [shape: f32[4,2,8,8], index: 14, kind: output, shape index: {1}]  }
   0x1   :  { %2432 = sst [smem:[#allocation6_spill]] %s2414_s0 }
   0x2   :  { %2433 = sst [smem:[#allocation7_spill]] %s2415_s1 }
   0x3   :  { %2434 = sst [smem:[#allocation8_spill]] %s2416_s2 }
   0x4   :  { %2435 = sst [smem:[#allocation9_spill]] %s2417_s3 }
   0x5   :  { %20 = vsyncpa [#allocation3], 0 }
   0x6   :  { %22 = vsyncpa [#allocation3 + $0x1], 0  ;;  %s2111_s29 = smov 0   ;;  %s2113_s30 = smov 0  }
   0x7   :  { %s2115_s15 = smov 0   ;;  %s2117_s16 = smov 0  }
   0x8 LB: > { %s2132_s17 = sadd.s32 4294967295, %s2014_s16   ;;  %s1674_s18 = sadd.s32 4294967294, %s2014_s16   ;;  %s2014_s16 = sphi %s2117_s16, %s2450_s16   ;;  %s2010_s15 = sphi %s2115_s15, %s2449_s15   ;;  %s2006_s30 = sphi %s2113_s30, %s2448_s30   ;;  %s2002_s29 = sphi %s2111_s29, %s2447_s29  }
   0x9   : > { %s2136_s19 = sadd.s32 1, %s2014_s16   ;;  %s339_s20 = sadd.s32 1, %s2010_s15 }
   0xa   : > { %s336_s21 = ssub.s32 %s2014_s16, %s2136_s19  ;;  %p349_p0 = scmp.ne.s32.totalorder %s2010_s15, %s2006_s30 }
   0xb   : > { %p337_p1 = scmp.eq.s32.totalorder %s336_s21, 0  ;;  %p350_p2 = scmp.eq.s32.totalorder %s2132_s17, 1 }
   0xc   : > { %p355_p3 = scmp.ne.s32.totalorder %s2006_s30, %s2002_s29  ;;  %p356_p4 = scmp.eq.s32.totalorder %s1674_s18, 1 }
   0xd   : > { %s2147_s22 = scalar_select %p337_p1, %s2010_s15, %s339_s20  }
   0xe   : > { %p2149_p5 = por %p350_p2, %p349_p0  ;;  %p2153_p6 = por %p356_p4, %p355_p3 }
   0xf   : > { %2436 = sst [smem:[#allocation5_spill]] %s2147_s22  ;;  %p1677_p7 = scmp.ge.s32.totalorder %s2014_s16, 1 }
  0x10   : > { %p417_p8 = scmp.lt.s32.totalorder %s2014_s16, 3 }
  0x12   : > { %p418_p9 = pnand %p1677_p7, %p417_p8 }
  0x13   : > { %s2439_s1 = sld [smem:[#allocation7_spill]] (!%p418_p9)  ;;  %v2016_v3 = vmov (!%p418_p9), 0.0|0.0   ;;  %vm2017_vm0 = vmmov (!%p418_p9), 0   ;;  %v2018_v6 = vmov (!%p418_p9), 0.0   ;;  %p466_p10 = scmp.lt.s32.totalorder (!%p418_p9), %s2132_s17, 1  ;;  %vm486_vm1 = vcmask (!%p418_p9), 261120  }
  0x14   : > { %421 = sbr.rel (%p418_p9) target bundleno = 2555 (0x9fb), region = 72  ;;  %1844 = vmatprep.subr.bf16.mxu1 (!%p418_p9), %v2016_v3  ;;  %1760 = vmatprep.mubr.msk.f32.mxu1 (!%p418_p9), %vm2017_vm0, %v2018_v6  ;;  %s2440_s0 = sld [smem:[#allocation6_spill]] (!%p418_p9)  ;;  %vm563_vm2 = vcmask (!%p418_p9), 64512   ;;  %vm1244_vm3 = vcmask (!%p418_p9), 130048   ;;  %vm1246_vm4 = vcmask (!%p418_p9), 195584   ;;  %vm1463_vm5 = vcmask (!%p418_p9), 523264  }
  0x15   : > { %1773 = vmatprep.subr.mxu0 (!%p418_p9), %v2018_v6  ;;  %1775 = vmatprep.mubr.msk.f32.mxu0 (!%p418_p9), %vm2017_vm0, %v2018_v6  ;;  %s2441_s2 = sld [smem:[#allocation8_spill]] (!%p418_p9)  ;;  %s2019_s21 = smov (!%p418_p9), 120  }
  0x16   : > { %s2020_s26 = smov (!%p418_p9), 96   ;;  %s2021_s27 = smov (!%p418_p9), 80  }
  0x17   : > { %s2024_s18 = smov (!%p418_p9), 112   ;;  %s2025_s20 = smov (!%p418_p9), 104  }
  0x18   : > { %s2442_s3 = sld [smem:[#allocation9_spill]] (!%p418_p9) }
  0x19   : > { %v475_v0 = vld [vmem:[%s2439_s1] sm:$0xff] (!%p418_p9)  ;;  %v476_v1 = vld [vmem:[%s2439_s1 + $0x8] sm:$0xff] (!%p418_p9)  ;;  %v477_v2 = vld [vmem:[%s2439_s1 + $0x10] sm:$0xff] (!%p418_p9) }
  0x1a   : > { %v1845_v4 = vpack.c.bf16 (!%p418_p9), %v476_v1, %v475_v0  ;;  %v478_v5 = vld [vmem:[%s2439_s1 + $0x18] sm:$0xff] (!%p418_p9) }
  0x1b   : > { %v1848_v7 = vpack.c.bf16 %v478_v5, %v477_v2  ;;  %s2179_s25 = scalar_select %p466_p10, %s2132_s17, 1  ;;  %v1681_v9 = vld [vmem:[%s2441_s2] ss:$0 sm:$0xff] }
  0x1c   : > { %1846 = vmatpush3.bf16.msra.mxu1 %v1845_v4 }
  0x1d   : > { %1847 = vmatprep.subr.bf16.mxu1 %v2016_v3  ;;  %s2429_s22 = sshll.u32 %s2179_s25, 3 }
  0x1e   : > { %s469_s28 = scalar_lea.vmem %s2440_s0, %s2429_s22  ;;  %s2023_s22 = smov 72  }
  0x1f   : > { %v2188_v8 = vld [vmem:[%s469_s28] sm:$0xff]  ;;  %s2022_s28 = smov 88  }
  0x20   : > { %1849 = vmatpush3.bf16.msra.mxu1 %v1848_v7 }
  0x21   : > { %1763 = vmatprep.subr.mxu1 %v2018_v6 }
  0x23   : > { %1761 = vmatmul.mubr.msk.f32.vlgmr.msra.gmra.mrb[0].mxu1 %vm486_vm1, %v2188_v8 }
  0x24   : > { %1765 = vmatprep.mubr.msk.f32.mxu1 %vm2017_vm0, %v2018_v6 }
  0xf6   : > { %v556_v10 = vpop.f32.mrb[0].mxu1 }
  0xf7   : > { %v2198_v11 = vadd.f32 %v1681_v9, %v556_v10  ;;  %v1762_v12 = vpop.f32.mrb[1].mxu1 }
  0xf8   : > { %v1249_v12 = vld [vmem:[%s2442_s3 + $0x8] sm:$0xff] }
  0xf9   : > { %727 = vrot.lane.b32.xlu1 %v2198_v11, %s2019_s21  ;;  %561 = vrot.lane.b32.xlu0 %v2198_v11, %s2020_s26 }
  0xfd   : > { %897 = vrot.lane.b32.xlu1 %v2198_v11, %s2021_s27  ;;  %729 = vrot.lane.b32.xlu0 %v2198_v11, %s2022_s28  ;;  %s2026_s27 = smov 56   ;;  %s2027_s28 = smov 64  }
 0x101   : > { %1065 = vrot.lane.b32.xlu1 %v2198_v11, %s2023_s22  ;;  %895 = vrot.lane.b32.xlu0 %v2198_v11, %s2024_s18  ;;  %s2430_s22 = sand.u32 1, %s2006_s30   ;;  %s2028_s18 = smov 48  }
 0x102   : > { %s1678_s21 = sshll.u32 %s2430_s22, 5 }
 0x103   : > { %s2231_s26 = scalar_lea.vmem [#allocation2], %s1678_s21 }
 0x105   : > { %1063 = vrot.lane.b32.xlu0 %v2198_v11, %s2025_s20  ;;  %s2029_s20 = smov 40  }
 0x16b   : > { %v728_v13 = vpop.permute.xlu1 %727  ;;  %v562_v14 = vpop.permute.xlu0 %561 }
 0x16c   : > { %1764 = vmatpush3.xpose.msk.msra.mxu1 %vm563_vm2, %v562_v14 }
 0x16d   : > { %1768 = vmatprep.subr.mxu1 %v2018_v6 }
 0x16f   : > { %1766 = vmatmul.mubr.msk.f32.vlgmr.msra.gmra.mrb[2].mxu1 %vm563_vm2, %v2198_v11  ;;  %v730_v15 = vpop.permute.xlu0 %729  ;;  %v898_v16 = vpop.permute.xlu1 %897 }
 0x170   : > { %1774 = vmatpush3.xpose.msk.msra.mxu0 %vm563_vm2, %v730_v15  ;;  %1770 = vmatprep.mubr.msk.f32.mxu1 %vm2017_vm0, %v2018_v6 }
 0x171   : > { %1783 = vmatprep.subr.mxu0 %v2018_v6 }
 0x173   : > { %1776 = vmatmul.mubr.msk.f32.vlgmr.msra.gmra.mrb[0].mxu0 %vm563_vm2, %v728_v13  ;;  %v896_v17 = vpop.permute.xlu0 %895  ;;  %v1066_v18 = vpop.permute.xlu1 %1065 }
 0x174   : > { %1784 = vmatpush3.xpose.msk.msra.mxu0 %vm563_vm2, %v898_v16  ;;  %1785 = vmatprep.mubr.msk.f32.mxu0 %vm2017_vm0, %v2018_v6 }
 0x175   : > { %1793 = vmatprep.subr.mxu0 %v2018_v6 }
 0x177   : > { %1786 = vmatmul.mubr.msk.f32.vlgmr.msra.gmra.mrb[2].mxu0 %vm563_vm2, %v896_v17  ;;  %v1064_v19 = vpop.permute.xlu0 %1063 }
 0x178   : > { %1794 = vmatpush3.xpose.msk.msra.mxu0 %vm563_vm2, %v1066_v18  ;;  %1795 = vmatprep.mubr.msk.f32.mxu0 %vm2017_vm0, %v2018_v6  ;;  %v1250_v18 = vld [vmem:[%s2442_s3 + $0x10] sm:$0xff] }
 0x179   : > { %1850 = vmatprep.subr.bf16.mxu0 %v2016_v3 }
 0x17b   : > { %1796 = vmatmul.mubr.msk.f32.vlgmr.msra.gmra.mrb[4].mxu0 %vm563_vm2, %v1064_v19  ;;  %v1251_v19 = vld [vmem:[%s2442_s3 + $0x18] sm:$0xff] }
 0x17c   : > { %1811 = vmatprep.mubr.msk.f32.mxu0 %vm2017_vm0, %v2018_v6 }
 0x242   : > { %v634_v20 = vpop.f32.mrb[2].mxu1 }
 0x243   : > { %v638_v21 = vmul.f32 0.35355338, %v634_v20  ;;  %v1767_v22 = vpop.f32.mrb[3].mxu1  ;;  %v1854_v20 = vpack.c.bf16 %v1251_v19, %v1250_v18 }
 0x245   : > { %639 = vst.msk [vmem:[%s2231_s26] sm:$0xff] %vm563_vm2, %v638_v21  ;;  %v640_v23 = vsel %vm563_vm2, %v638_v21, -inf }
 0x246   : > { %v801_v24 = vpop.f32.mrb[0].mxu0  ;;  %641 = vmax.xlane.f32.xlu1 %v640_v23 }
 0x247   : > { %v805_v25 = vmul.f32 0.35355338, %v801_v24  ;;  %v1777_v26 = vpop.f32.mrb[1].mxu0 }
 0x249   : > { %1688 = vst.msk [vmem:[%s2231_s26 + $0x8] sm:$0xff] %vm563_vm2, %v805_v25  ;;  %v808_v27 = vsel %vm563_vm2, %v805_v25, -inf }
 0x24a   : > { %809 = vmax.xlane.f32.xlu0 %v808_v27  ;;  %v969_v28 = vpop.f32.mrb[2].mxu0 }
 0x24b   : > { %v973_v29 = vmul.f32 0.35355338, %v969_v28  ;;  %v1787_v30 = vpop.f32.mrb[3].mxu0 }
 0x24d   : > { %1692 = vst.msk [vmem:[%s2231_s26 + $0x10] sm:$0xff] %vm563_vm2, %v973_v29  ;;  %v976_v31 = vsel %vm563_vm2, %v973_v29, -inf }
 0x24e   : > { %977 = vmax.xlane.f32.xlu0 %v976_v31  ;;  %v1137_v32 = vpop.f32.mrb[4].mxu0  ;;  %v1698_v31 = vld [vmem:[%s2418_s4] ss:$0 sm:$0xff] }
 0x24f   : > { %v1141_v33 = vmul.f32 0.35355338, %v1137_v32  ;;  %v1797_v34 = vpop.f32.mrb[5].mxu0 }
 0x251   : > { %1696 = vst.msk [vmem:[%s2231_s26 + $0x18] sm:$0xff] %vm563_vm2, %v1141_v33  ;;  %v1144_v35 = vsel %vm563_vm2, %v1141_v33, -inf }
 0x252   : > { %1145 = vmax.xlane.f32.xlu1 %v1144_v35 }
 0x263   : > { %819 = vrot.lane.b32.xlu1 %v2198_v11, %s2026_s27 }
 0x2d3   : > { %v642_v36 = vpop.xlane.xlu1 %641 }
 0x2d4   : > { %v643_v37 = vsub.f32 %v638_v21, %v642_v36 }
 0x2d6   : > { %v644_v38 = vmul.f32 1.442695, %v643_v37 }
 0x2d7   : > { %v810_v39 = vpop.xlane.xlu0 %809 }
 0x2d8   : > { %1932 = vpow2.f32 %v644_v38  ;;  %v811_v40 = vsub.f32 %v805_v25, %v810_v39 }
 0x2da   : > { %v812_v41 = vmul.f32 1.442695, %v811_v40 }
 0x2db   : > { %v978_v51 = vpop.xlane.xlu0 %977 }
 0x2dc   : > { %1934 = vpow2.f32 %v812_v41  ;;  %v979_v52 = vsub.f32 %v973_v29, %v978_v51 }
 0x2de   : > { %v980_v53 = vmul.f32 1.442695, %v979_v52  ;;  %v1452_v52 = vld [vmem:[%s2423_s9 + $0x20] sm:$0xff] }
 0x2df   : > { %v1146_v42 = vpop.xlane.xlu1 %1145 }
 0x2e0   : > { %v1147_v43 = vsub.f32 %v1141_v33, %v1146_v42  ;;  %v1364_v42 = vld [vmem:[%s2421_s7 + $0x8] sm:$0xff] }
 0x2e2   : > { %v1933_v44 = vpop.eup %1932  ;;  %v1148_v45 = vmul.f32 1.442695, %v1147_v43 }
 0x2e3   : > { %v646_v46 = vsel %vm563_vm2, %v1933_v44, 0.0  ;;  %v820_v56 = vpop.permute.xlu1 %819 }
 0x2e4   : > { %1936 = vpow2.f32 %v1148_v45  ;;  %647 = vadd.xlane.f32.xlu0 %v646_v46  ;;  %v1448_v46 = vld [vmem:[%s2423_s9] sm:$0xff] }
 0x2e5   : > { %1938 = vpow2.f32 %v980_v53  ;;  %v1453_v53 = vld [vmem:[%s2423_s9 + $0x28] sm:$0xff] }
 0x2e6   : > { %v1935_v47 = vpop.eup %1934 }
 0x2e7   : > { %v814_v48 = vsel %vm563_vm2, %v1935_v47, 0.0 }
 0x2e8   : > { %815 = vadd.xlane.f32.xlu1 %v814_v48  ;;  %v1450_v48 = vld [vmem:[%s2423_s9 + $0x10] sm:$0xff] }
 0x2ee   : > { %v1937_v49 = vpop.eup %1936 }
 0x2ef   : > { %v1150_v50 = vsel %vm563_vm2, %v1937_v49, 0.0  ;;  %v1939_v54 = vpop.eup %1938 }
 0x2f0   : > { %1151 = vadd.xlane.f32.xlu1 %v1150_v50  ;;  %v982_v55 = vsel %vm563_vm2, %v1939_v54, 0.0  ;;  %v1451_v50 = vld [vmem:[%s2423_s9 + $0x18] sm:$0xff] }
 0x2f1   : > { %v1866_v51 = vpack.c.bf16 %v1451_v50, %v1450_v48 }
 0x2fa   : > { %651 = vrot.lane.b32.xlu0 %v2198_v11, %s2027_s28  ;;  %s2031_s28 = smov 16  }
 0x301   : > { %987 = vrot.lane.b32.xlu1 %v2198_v11, %s2028_s18  ;;  %s2032_s18 = smov 24  }
 0x319   : > { %983 = vadd.xlane.f32.xlu0 %v982_v55 }
 0x32f   : > { %1155 = vrot.lane.b32.xlu0 %v2198_v11, %s2029_s20  ;;  %v1248_v11 = vld [vmem:[%s2442_s3] sm:$0xff]  ;;  %s2431_s20 = smov 8  }
 0x330   : > { %v1851_v13 = vpack.c.bf16 %v1249_v12, %v1248_v11 }
 0x332   : > { %1852 = vmatpush3.bf16.msra.mxu0 %v1851_v13 }
 0x333   : > { %1853 = vmatprep.subr.bf16.mxu0 %v2016_v3 }
 0x336   : > { %1855 = vmatpush3.bf16.msra.mxu0 %v1854_v20 }
 0x337   : > { %1862 = vmatprep.subr.bf16.mxu0 %v2016_v3 }
 0x371   : > { %v648_v57 = vpop.xlane.xlu0 %647 }
 0x372   : > { %1940 = vrcp.f32 %v648_v57 }
 0x375   : > { %v652_v58 = vpop.permute.xlu0 %651  ;;  %v816_v59 = vpop.xlane.xlu1 %815 }
 0x376   : > { %1942 = vrcp.f32 %v816_v59  ;;  %1769 = vmatpush3.msra.mxu1 %v652_v58  ;;  %v1700_v59 = vld [vmem:[%s2419_s5] ss:$0 sm:$0xff] }
 0x377   : > { %1778 = vmatprep.subr.mxu1 %v2018_v6 }
 0x37c   : > { %v1941_v60 = vpop.eup %1940 }
 0x37d   : > { %v650_v61 = vmul.f32 %v1941_v60, %v1933_v44  ;;  %v1152_v62 = vpop.xlane.xlu1 %1151  ;;  %v1366_v44 = vld [vmem:[%s2421_s7 + $0x18] sm:$0xff] }
 0x37f   : > { %1771 = vmatmul.mubr.msk.f32.vlgmr.msra.gmra.mrb[4].mxu1 %vm563_vm2, %v650_v61  ;;  %v1701_v61 = vld [vmem:[%s2420_s6] ss:$0 sm:$0xff] }
 0x380   : > { %v1943_v63 = vpop.eup %1942  ;;  %1779 = vmatpush3.msra.mxu1 %v820_v56  ;;  %1780 = vmatprep.mubr.msk.f32.mxu1 %vm2017_vm0, %v2018_v6 }
 0x381   : > { %v818_v0 = vmul.f32 %v1943_v63, %v1935_v47  ;;  %v988_v1 = vpop.permute.xlu1 %987  ;;  %1788 = vmatprep.subr.mxu1 %v2018_v6  ;;  %v1449_v47 = vld [vmem:[%s2423_s9 + $0x8] sm:$0xff] }
 0x383   : > { %1781 = vmatmul.mubr.msk.f32.vlgmr.msra.gmra.mrb[6].mxu1 %vm563_vm2, %v818_v0  ;;  %v1455_v0 = vld [vmem:[%s2423_s9 + $0x38] sm:$0xff] }
 0x384   : > { %1789 = vmatpush3.msra.mxu1 %v988_v1  ;;  %1790 = vmatprep.mubr.msk.f32.mxu1 %vm2017_vm0, %v2018_v6 }
 0x385   : > { %1798 = vmatprep.subr.mxu1 %v2018_v6 }
 0x3a6   : > { %v984_v2 = vpop.xlane.xlu0 %983 }
 0x3a7   : > { %1944 = vrcp.f32 %v984_v2  ;;  %v1702_v2 = vld [vmem:[%s2422_s8] ss:$0 sm:$0xff] }
 0x3a8   : > { %1946 = vrcp.f32 %v1152_v62 }
 0x3aa   : > { %v1156_v9 = vpop.permute.xlu0 %1155 }
 0x3b1   : > { %v1945_v4 = vpop.eup %1944 }
 0x3b2   : > { %v986_v5 = vmul.f32 %v1945_v4, %v1939_v54  ;;  %v1947_v7 = vpop.eup %1946  ;;  %v1869_v54 = vpack.c.bf16 %v1453_v53, %v1452_v52 }
 0x3b3   : > { %v1154_v10 = vmul.f32 %v1947_v7, %v1937_v49  ;;  %v1863_v49 = vpack.c.bf16 %v1449_v47, %v1448_v46 }
 0x3b4   : > { %1791 = vmatmul.mubr.msk.f32.vlgmr.msra.gmra.mrb[8].mxu1 %vm563_vm2, %v986_v5 }
 0x3b5   : > { %1799 = vmatpush3.msra.mxu1 %v1156_v9  ;;  %1800 = vmatprep.mubr.msk.f32.mxu1 %vm2017_vm0, %v2018_v6 }
 0x3b6   : > { %1856 = vmatprep.subr.bf16.mxu1 %v2016_v3 }
 0x3b8   : > { %1801 = vmatmul.mubr.msk.f32.vlgmr.msra.gmra.mrb[10].mxu1 %vm563_vm2, %v1154_v10  ;;  %v1704_v10 = vld [vmem:[%s2424_s10] ss:$0 sm:$0xff] }
 0x3b9   : > { %1822 = vmatprep.mubr.msk.f32.mxu1 %vm2017_vm0, %v2018_v6 }
 0x452   : > { %v723_v14 = vpop.f32.mrb[4].mxu1 }
 0x453   : > { %v1772_v15 = vpop.f32.mrb[5].mxu1 }
 0x456   : > { %v891_v16 = vpop.f32.mrb[6].mxu1 }
 0x457   : > { %1232 = vrot.lane.b32.xlu1 %v891_v16, %s2431_s20  ;;  %v1782_v17 = vpop.f32.mrb[7].mxu1  ;;  %s2443_s20 = sand.u32 1, %s2006_s30  }
 0x458   : > { %s2360_s21 = scalar_lea.sflag [#allocation3], %s2443_s20 }
 0x487   : > { %v1059_v21 = vpop.f32.mrb[8].mxu1 }
 0x488   : > { %1236 = vrot.lane.b32.xlu0 %v1059_v21, %s2031_s28  ;;  %v1792_v22 = vpop.f32.mrb[9].mxu1  ;;  %s1588_s28 = sshll.u32 %s2231_s26, 4  ;;  %s2033_s26 = smov [#allocation2]   ;;  %s2350_s28 = int_to_ptr.vmem [resolvable:$true] %s1588_s28 }
 0x489   : > { %s1952_s27 = scalar_lea.vmem %s2350_s28, 512  ;;  %s1956_s2 = sshll.u32 %s2033_s26, 4  ;;  %s1957_s2 = int_to_ptr.vmem [resolvable:$false] %s1956_s2 }
 0x48a   : > { %p1953_p11 = scmp.ne.s32.totalorder %s2350_s28, %s1952_s27  ;;  %s1958_s3 = scalar_lea.vmem %s1957_s2, 1024 }
 0x48b   : > { %v1227_v23 = vpop.f32.mrb[10].mxu1  ;;  %p1959_p0 = scmp.lt.s32.totalorder %s2350_s28, %s1957_s2  ;;  %p1960_p1 = scmp.lt.s32.totalorder %s1958_s3, %s1952_s27 }
 0x48c   : > { %1240 = vrot.lane.b32.xlu1 %v1227_v23, %s2032_s18  ;;  %v1802_v24 = vpop.f32.mrb[11].mxu1  ;;  %s1709_s18 = sshll.u32 %s2132_s17, 7  ;;  %p1954_p12 = pnand %p1953_p11, %p2149_p5 }
 0x48d   : > { %s2356_s1 = scalar_lea.hbm %s2428_s14, %s1709_s18  ;;  %p1961_p2 = por %p1960_p1, %p1959_p0 }
 0x48e   : > { %p1955_p13 = pneg %p1954_p12 }
 0x490   : > { %p1962_p3 = pnand %p1961_p2, %p1955_p13 }
 0x4c9   : > { %v1233_v25 = vpop.permute.xlu1 %1232 }
 0x4ca   : > { %v1243_v27 = vsel %vm563_vm2, %v723_v14, %v1233_v25 }
 0x4fa   : > { %v1237_v26 = vpop.permute.xlu0 %1236 }
 0x4fb   : > { %v1245_v28 = vsel %vm1244_vm3, %v1243_v27, %v1237_v26 }
 0x4fe   : > { %v1241_v29 = vpop.permute.xlu1 %1240 }
 0x4ff   : > { %v1247_v30 = vsel %vm1246_vm4, %v1245_v28, %v1241_v29 }
 0x500   : > { %1812 = vmatmul.mubr.msk.f32.vlgmr.msra.gmra.mrb[6].mxu0 %vm486_vm1, %v1247_v30 }
 0x501   : > { %1841 = vmatprep.mubr.msk.f32.mxu0 %vm2017_vm0, %v2018_v6  ;;  %v1363_v6 = vld [vmem:[%s2421_s7] sm:$0xff]  ;;  %1864 = vmatpush3.bf16.msra.mxu0 %v1863_v49 }
 0x502   : > { %v1857_v43 = vpack.c.bf16 %v1364_v42, %v1363_v6  ;;  %1865 = vmatprep.subr.bf16.mxu0 %v2016_v3 }
 0x504   : > { %1858 = vmatpush3.bf16.msra.mxu1 %v1857_v43 }
 0x505   : > { %1859 = vmatprep.subr.bf16.mxu1 %v2016_v3  ;;  %1867 = vmatpush3.bf16.msra.mxu0 %v1866_v51 }
 0x506   : > { %1868 = vmatprep.subr.bf16.mxu0 %v2016_v3 }
 0x509   : > { %1870 = vmatpush3.bf16.msra.mxu0 %v1869_v54 }
 0x50a   : > { %1871 = vmatprep.subr.bf16.mxu0 %v2016_v3  ;;  %v1454_v3 = vld [vmem:[%s2423_s9 + $0x30] sm:$0xff] }
 0x50b   : > { %v1872_v1 = vpack.c.bf16 %v1455_v0, %v1454_v3 }
 0x50d   : > { %1873 = vmatpush3.bf16.msra.mxu0 %v1872_v1 }
 0x5d3   : > { %v1328_v32 = vpop.f32.mrb[6].mxu0 }
 0x5d4   : > { %v1329_v33 = vadd.f32 %v1698_v31, %v1328_v32  ;;  %v1813_v34 = vpop.f32.mrb[7].mxu0 }
 0x5d6   : > { %v1332_v35 = vadd.f32 %v1329_v33, %v2188_v8  ;;  %v1365_v8 = vld [vmem:[%s2421_s7 + $0x10] sm:$0xff] }
 0x5d7   : > { %v1860_v45 = vpack.c.bf16 %v1366_v44, %v1365_v8 }
 0x5d8   : > { %v1335_v36 = vsel %vm486_vm1, %v1332_v35, 0.0 }
 0x5d9   : > { %1336 = vadd.xlane.f32.xlu0 %v1335_v36  ;;  %1861 = vmatpush3.bf16.msra.mxu1 %v1860_v45 }
 0x666   : > { %v1337_v37 = vpop.xlane.xlu0 %1336 }
 0x667   : > { %v1339_v38 = vmul.f32 0.03125, %v1337_v37 }
 0x669   : > { %v1340_v39 = vsub.f32 %v1332_v35, %v1339_v38 }
 0x66b   : > { %v1341_v40 = vmul.f32 %v1340_v39, %v1340_v39 }
 0x66d   : > { %v1342_v41 = vsel %vm486_vm1, %v1341_v40, 0.0 }
 0x66e   : > { %1343 = vadd.xlane.f32.xlu1 %v1342_v41 }
 0x6fb   : > { %v1344_v55 = vpop.xlane.xlu1 %1343 }
 0x6fc   : > { %v1345_v56 = vmul.f32 0.03125, %v1344_v55 }
 0x6fe   : > { %v1346_v57 = vadd.f32 1e-05, %v1345_v56 }
 0x700   : > { %1948 = vrsqrt.f32 %v1346_v57 }
 0x70a   : > { %v1949_v58 = vpop.eup %1948 }
 0x70b   : > { %v1348_v60 = vmul.f32 %v1949_v58, %v1340_v39 }
 0x70d   : > { %v1355_v62 = vmul.f32 %v1700_v59, %v1348_v60 }
 0x70f   : > { %v1362_v63 = vadd.f32 %v1701_v61, %v1355_v62 }
 0x711   : > { %1823 = vmatmul.mubr.msk.f32.vlgmr.msra.gmra.mrb[12].mxu1 %vm486_vm1, %v1362_v63 }
 0x7e4   : > { %v1443_v4 = vpop.f32.mrb[12].mxu1 }
 0x7e5   : > { %v1444_v5 = vadd.f32 %v1702_v2, %v1443_v4  ;;  %v1824_v7 = vpop.f32.mrb[13].mxu1 }
 0x7e7   : > { %v1447_v9 = vmax.f32 %v1444_v5, 0.0 }
 0x7e9   : > { %1842 = vmatmul.mubr.msk.f32.vlgmr.msra.gmra.mrb[8].mxu0 %vm1463_vm5, %v1447_v9 }
 0x8bc   : > { %v1533_v11 = vpop.f32.mrb[8].mxu0 }
 0x8bd   : > { %v1534_v12 = vadd.f32 %v1704_v10, %v1533_v11  ;;  %v1843_v13 = vpop.f32.mrb[9].mxu0 }
 0x8bf   : > { %v1537_v14 = vadd.f32 %v1534_v12, %v1362_v63 }
 0x8c1   : > { %v1540_v15 = vsel %vm486_vm1, %v1537_v14, 0.0 }
 0x8c2   : > { %1541 = vadd.xlane.f32.xlu0 %v1540_v15 }
 0x94f   : > { %v1542_v16 = vpop.xlane.xlu0 %1541 }
 0x950   : > { %v1543_v17 = vmul.f32 0.03125, %v1542_v16 }
 0x952   : > { %v1544_v18 = vsub.f32 %v1537_v14, %v1543_v17 }
 0x954   : > { %v1545_v19 = vmul.f32 %v1544_v18, %v1544_v18 }
 0x956   : > { %v1546_v20 = vsel %vm486_vm1, %v1545_v19, 0.0 }
 0x957   : > { %1547 = vadd.xlane.f32.xlu0 %v1546_v20 }
 0x958   : > { %1965 = shalt.err (!%p1962_p3)
}
 0x959   : > { %s1966_s17 = scalar_lea.hbm %s2356_s1, 512  ;;  %s1970_s22 = scalar_lea.hbm %s2428_s14, 1024 }
 0x95a   : > { %p1967_p4 = scmp.ne.s32.totalorder %s2356_s1, %s1966_s17  ;;  %p1971_p9 = scmp.lt.u32.totalorder %s2356_s1, %s2428_s14 }
 0x95b   : > { %p1972_p10 = scmp.lt.u32.totalorder %s1970_s22, %s1966_s17  ;;  %p1974_p12 = scmp.lt.u32.totalorder %s1966_s17, %s2356_s1 }
 0x95c   : > { %p1968_p7 = pnand %p1967_p4, %p2149_p5 }
 0x95d   : > { %p1973_p11 = por %p1972_p10, %p1971_p9 }
 0x95e   : > { %p1969_p8 = pneg %p1968_p7 }
 0x95f   : > { %p1975_p13 = por %p1974_p12, %p1973_p11 }
 0x961   : > { %p1976_p0 = pnand %p1975_p13, %p1969_p8 }
 0x963   : > { %1979 = shalt.err (!%p1976_p0)
}
 0x964   : > { %s2034_s27 = smov 128   ;;  %s2035_s2 = smov 256   ;;  %v1706_v25 = vld [vmem:[%s2425_s11] ss:$0 sm:$0xff] }
 0x965   : > { %s2444_s3 = smov 8   ;;  %v1707_v27 = vld [vmem:[%s2426_s12] ss:$0 sm:$0xff]  ;;  %s2445_s20 = sshll.u32 %s2179_s25, 3 }
 0x966   : > { %1874 = dma.vmem_to_hbm [thread:$0]  (%p2149_p5), %s2350_s28, 512, %s2356_s1, %s2360_s21, %s2034_s27, %s2035_s2, %s2444_s3  }
 0x967   : > { %s473_s28 = scalar_lea.vmem %s2427_s13, %s2445_s20 }
 0x9e4   : > { %v1548_v21 = vpop.xlane.xlu0 %1547 }
 0x9e5   : > { %v1549_v22 = vmul.f32 0.03125, %v1548_v21 }
 0x9e7   : > { %v1550_v23 = vadd.f32 1e-05, %v1549_v22 }
 0x9e9   : > { %1950 = vrsqrt.f32 %v1550_v23 }
 0x9f3   : > { %v1951_v24 = vpop.eup %1950 }
 0x9f4   : > { %v1552_v26 = vmul.f32 %v1951_v24, %v1544_v18 }
 0x9f6   : > { %v1559_v28 = vmul.f32 %v1706_v25, %v1552_v26 }
 0x9f8   : > { %v1566_v29 = vadd.f32 %v1707_v27, %v1559_v28 }
 0x9fa   : > { %1567 = vst.msk [vmem:[%s473_s28] sm:$0xff] %vm486_vm1, %v1566_v29 }
 0x9fb PF: > { %p1880_p5 = scmp.ge.s32.totalorder %s2014_s16, 2  ;;  %s1610_s1 = sand.u32 1, %s2002_s29  }
 0x9fc   : > { %s1611_s21 = scalar_lea.sflag [#allocation3], %s1610_s1 }
 0x9fd   : > { %p1877_p1 = pnand %p1880_p5, %p2153_p6 }
 0x9ff   : > { %1997 = dma.done.wait (!%p1877_p1), %s1611_s21, 512  }
 0xa00   : > { %1999 = vsyncadd (!%p1877_p1), %s1611_s21, 4294966784  ;;  %s2446_s25 = sld [smem:[#allocation5_spill]]  ;;  %p25_p2 = scmp.ge.s32.totalorder %s2136_s19, 4  }
 0xa01   : > { %s2447_s29 = smov %s2006_s30  ;;  %s2448_s30 = smov %s2010_s15 }
 0xa02   : > { %s2450_s16 = smov %s2136_s19  ;;  %27 = sbr.rel (!%p25_p2) target bundleno = 8 (0x8), region = 122 }
 0xa06   : > { %s2449_s15 = smov %s2446_s25 }
 0xa09   :  { %1616 = vsyncpa [#allocation3], 1 }
 0xa0a   :  { %1618 = vsyncpa [#allocation3 + $0x1], 1 }

// kernel: gtn_channel_wise_forward.7
= control target key start
LH: loop header
LB: loop body
LE: loop exit
PB: predicated region body
PF: predicated region fallthrough
CT: control target
= control target key end

     0   :  { %s381_s0 = inlined_call_operand.vmem [shape: f32[2,256], index: 0, kind: input, shape index: {}]   ;;  %s382_s1 = inlined_call_operand.vmem [shape: f32[256,4], index: 1, kind: input, shape index: {}]   ;;  %s383_s2 = inlined_call_operand.vmem [shape: f32[1,4], index: 2, kind: input, shape index: {}]   ;;  %s384_s3 = inlined_call_operand.hbm [shape: f32[2,4], index: 3, kind: output, shape index: {}]  }
   0x1   :  { %v32_v0 = vld [vmem:[%s382_s1 + $0x80] sm:$0xff]  ;;  %v33_v1 = vld [vmem:[%s382_s1 + $0x88] sm:$0xff]  ;;  %v34_v5 = vld [vmem:[%s382_s1 + $0x90] sm:$0xff] }
   0x2   :  { %v16_v2 = vld [vmem:[%s382_s1] sm:$0xff]  ;;  %v189_v3 = vpack.c.bf16 %v33_v1, %v32_v0  ;;  %v17_v4 = vld [vmem:[%s382_s1 + $0x8] sm:$0xff]  ;;  %v35_v6 = vld [vmem:[%s382_s1 + $0x98] sm:$0xff] }
   0x3   :  { %v191_v7 = vpack.c.bf16 %v17_v4, %v16_v2  ;;  %v193_v8 = vpack.c.bf16 %v35_v6, %v34_v5  ;;  %v18_v9 = vld [vmem:[%s382_s1 + $0x10] sm:$0xff]  ;;  %v19_v10 = vld [vmem:[%s382_s1 + $0x18] sm:$0xff]  ;;  %v36_v11 = vld [vmem:[%s382_s1 + $0xa0] sm:$0xff] }
   0x4   :  { %190 = vmatprep.subr.bf16.mxu0 %v189_v3  ;;  %v37_v12 = vld [vmem:[%s382_s1 + $0xa8] sm:$0xff]  ;;  %v195_v13 = vpack.c.bf16 %v19_v10, %v18_v9  ;;  %v20_v15 = vld [vmem:[%s382_s1 + $0x20] sm:$0xff]  ;;  %v38_v17 = vld [vmem:[%s382_s1 + $0xb0] sm:$0xff] }
   0x5   :  { %192 = vmatpush3.bf16.msra.mxu0 %v191_v7  ;;  %v197_v14 = vpack.c.bf16 %v37_v12, %v36_v11  ;;  %v21_v16 = vld [vmem:[%s382_s1 + $0x28] sm:$0xff]  ;;  %v39_v18 = vld [vmem:[%s382_s1 + $0xb8] sm:$0xff]  ;;  %v22_v21 = vld [vmem:[%s382_s1 + $0x30] sm:$0xff] }
   0x6   :  { %194 = vmatprep.subr.bf16.mxu0 %v193_v8  ;;  %v199_v19 = vpack.c.bf16 %v21_v16, %v20_v15  ;;  %v201_v20 = vpack.c.bf16 %v39_v18, %v38_v17  ;;  %v23_v22 = vld [vmem:[%s382_s1 + $0x38] sm:$0xff]  ;;  %v40_v23 = vld [vmem:[%s382_s1 + $0xc0] sm:$0xff]  ;;  %v41_v24 = vld [vmem:[%s382_s1 + $0xc8] sm:$0xff] }
   0x7   :  { %v153_v25 = vld.sshfl [vmem:[%s381_s0] sm:$0x33 pattern:$0x76325410] }
   0x8   :  { %v63_v26 = vcombine.high %v153_v25, %v153_v25 }
   0x9   :  { %196 = vmatpush3.bf16.msra.mxu0 %v195_v13 }
   0xa   :  { %198 = vmatprep.subr.bf16.mxu0 %v197_v14 }
   0xb   :  { %8 = vsyncpa [#allocation3], 0  ;;  %v203_v27 = vpack.c.bf16 %v23_v22, %v22_v21  ;;  %v205_v28 = vpack.c.bf16 %v41_v24, %v40_v23  ;;  %v24_v29 = vld [vmem:[%s382_s1 + $0x40] sm:$0xff]  ;;  %v25_v30 = vld [vmem:[%s382_s1 + $0x48] sm:$0xff]  ;;  %130 = vmatprep.mubr.f32.mxu0 %v63_v26  ;;  %s246_s25 = smov [#allocation2]   ;;  %vm136_vm0 = vcmask 25600  }
   0xc   :  { %v42_v31 = vld [vmem:[%s382_s1 + $0xd0] sm:$0xff]  ;;  %v43_v32 = vld [vmem:[%s382_s1 + $0xd8] sm:$0xff]  ;;  %v207_v33 = vpack.c.bf16 %v25_v30, %v24_v29  ;;  %v44_v37 = vld [vmem:[%s382_s1 + $0xe0] sm:$0xff]  ;;  %s144_s26 = sshll.u32 %s246_s25, 4  ;;  %s145_s26 = int_to_ptr.vmem [resolvable:$true] %s144_s26 }
   0xd   :  { %200 = vmatpush3.bf16.msra.mxu0 %v199_v19  ;;  %v209_v34 = vpack.c.bf16 %v43_v32, %v42_v31  ;;  %v26_v35 = vld [vmem:[%s382_s1 + $0x50] sm:$0xff]  ;;  %v27_v36 = vld [vmem:[%s382_s1 + $0x58] sm:$0xff]  ;;  %v45_v38 = vld [vmem:[%s382_s1 + $0xe8] sm:$0xff]  ;;  %s222_s27 = scalar_lea.vmem %s145_s26, 32  ;;  %p227_p1 = scmp.lt.s32.totalorder %s145_s26, %s145_s26 }
   0xe   :  { %202 = vmatprep.subr.bf16.mxu0 %v201_v20  ;;  %v211_v39 = vpack.c.bf16 %v27_v36, %v26_v35  ;;  %v213_v40 = vpack.c.bf16 %v45_v38, %v44_v37  ;;  %v28_v41 = vld [vmem:[%s382_s1 + $0x60] sm:$0xff]  ;;  %v29_v42 = vld [vmem:[%s382_s1 + $0x68] sm:$0xff]  ;;  %v46_v43 = vld [vmem:[%s382_s1 + $0xf0] sm:$0xff]  ;;  %p223_p0 = scmp.ne.s32.totalorder %s145_s26, %s222_s27  ;;  %p228_p2 = scmp.lt.s32.totalorder %s222_s27, %s222_s27 }
   0xf   :  { %v47_v44 = vld [vmem:[%s382_s1 + $0xf8] sm:$0xff]  ;;  %v215_v45 = vpack.c.bf16 %v29_v42, %v28_v41  ;;  %v30_v47 = vld [vmem:[%s382_s1 + $0x70] sm:$0xff]  ;;  %v152_v51 = vld [vmem:[%s383_s2] ss:$0 sm:$0xff] }
  0x10   :  { %v217_v46 = vpack.c.bf16 %v47_v44, %v46_v43  ;;  %v31_v48 = vld [vmem:[%s382_s1 + $0x78] sm:$0xff]  ;;  %p229_p3 = por %p228_p2, %p227_p1 }
  0x11   :  { %204 = vmatpush3.bf16.msra.mxu0 %v203_v27  ;;  %v219_v49 = vpack.c.bf16 %v31_v48, %v30_v47 }
  0x12   :  { %206 = vmatprep.subr.bf16.mxu0 %v205_v28  ;;  %p230_p4 = pnand %p229_p3, %p223_p0 }
  0x15   :  { %208 = vmatpush3.bf16.msra.mxu0 %v207_v33 }
  0x16   :  { %210 = vmatprep.subr.bf16.mxu0 %v209_v34 }
  0x19   :  { %212 = vmatpush3.bf16.msra.mxu0 %v211_v39 }
  0x1a   :  { %214 = vmatprep.subr.bf16.mxu0 %v213_v40 }
  0x1d   :  { %216 = vmatpush3.bf16.msra.mxu0 %v215_v45 }
  0x1e   :  { %218 = vmatprep.subr.bf16.mxu0 %v217_v46 }
  0x21   :  { %220 = vmatpush3.bf16.msra.mxu0 %v219_v49 }
  0x24   :  { %131 = vmatmul.mubr.f32.vlgmr.msra.gmra.mrb[0].mxu0 %v153_v25 }
  0xf7   :  { %v186_v50 = vpop.f32.mrb[0].mxu0 }
  0xf8   :  { %v187_v52 = vpop.f32.mrb[1].mxu0 }
  0xf9   :  { %v188_v53 = vadd.f32 %v187_v52, %v186_v50 }
  0xfb   :  { %v133_v54 = vadd.f32 %v188_v53, %v152_v51 }
  0xfd   :  { %137 = vst.msk [vmem:[#allocation2] sm:$0x3] %vm136_vm0, %v133_v54 }
  0xfe   :  { %233 = shalt.err (!%p230_p4)
}
  0xff   :  { %s234_s0 = scalar_lea.hbm %s384_s3, 32 }
 0x100   :  { %p235_p5 = scmp.ne.s32.totalorder %s384_s3, %s234_s0  ;;  %p238_p6 = scmp.lt.u32.totalorder %s234_s0, %s384_s3 }
 0x102   :  { %p240_p7 = pnand %p238_p6, %p235_p5 }
 0x104   :  { %243 = shalt.err (!%p240_p7)
}
 0x105   :  { %147 = dma.vmem_to_hbm [thread:$0]  %s145_s26, 32, %s384_s3, [#allocation3]  }
 0x106   :  { %244 = dma.done.wait [#allocation3], 32  }
 0x107   :  { %245 = vsyncadd [#allocation3], 4294967264 }
 0x108   :  { %151 = vsyncpa [#allocation3], 1 }

</bundles_post_ra>
